<compile_context>
chip_gen: v6e
topology: v6e:2x2x1
jax: 0.10.0
libtpu: 0.0.40
codegen_flags: <defaults>
</compile_context>

<pallas_src>
import functools

import jax
import jax.numpy as jnp
from jax.experimental import pallas as pl
from jax.experimental.pallas import tpu as pltpu


# ----------------------------- Pallas kernel --------------------------------
def rasg_kernel(
    x_ref,        # (1, GN, Fin+Frel)       compute dtype (bf16)   [feat|er]
    abd_ref,      # (1, L, GN, NB*GN)       compute dtype          block-diag adj
    w_in_ref,     # (Fin+Frel, H)           compute dtype
    w_layer_ref,  # (L, H, (NB+1)*H)        compute dtype          [W_loop|B_0|..]
    w_attn_ref,   # (H+Frel, H)             compute dtype
    pslab_ref,    # (L+6, H)                f32 packed small params
    out_ref,      # (1, G, 1)               f32
    hw_ref,       # scratch (NB*GN, H)      compute dtype
    ha_ref,       # scratch (GN, H+Frel)    compute dtype
    *, G, L, NB, H, Fin,
):
    f32 = jnp.float32
    cd = w_in_ref.dtype                    # MXU operand dtype (bf16)

    x = x_ref[0]                           # (GN, Fin+Frel)
    GN = x.shape[0]
    N = GN // G
    er = x[:, Fin:]                        # (GN, Frel)

    # packed small f32 parameters (single slab, static row slices)
    b_in = pslab_ref[0:1, :]
    b_attn = pslab_ref[L + 1:L + 2, :]
    w_as = pslab_ref[L + 2:L + 3, :]
    w_sc = pslab_ref[L + 3:L + 4, :]
    b_as = pslab_ref[L + 4:L + 5, 0:1]     # (1, 1)
    b_sc = pslab_ref[L + 5:L + 6, 0:1]     # (1, 1)

    # stage the loop-invariant er half of the attention input once
    ha_ref[:, H:] = er

    # input projection + relu (single fused matmul, K = Fin + Frel)
    h = jnp.maximum(
        jnp.dot(x, w_in_ref[...], preferred_element_type=f32) + b_in, 0.0)  # (GN, H) f32

    # RelGraphConv layers: one fused weight matmul + one adjacency matmul each
    for l in range(L):                     # static unroll (L is small)
        hc = h.astype(cd)
        # [hc @ W_loop | hc @ B_0 | ... | hc @ B_{NB-1}]  ->  (GN, (NB+1)*H)
        lw = jnp.dot(hc, w_layer_ref[l], preferred_element_type=f32)
        agg = lw[:, :H] + pslab_ref[1 + l:2 + l, :]              # self-loop + bias
        # row-stack the basis-projected features into a bf16 scratch
        for k in range(NB):                # static unroll (NB < R)
            hw_ref[k * GN:(k + 1) * GN, :] = (
                lw[:, (k + 1) * H:(k + 2) * H].astype(cd))
        # single block-diagonal adjacency contraction, K = NB*GN
        agg = agg + jnp.dot(abd_ref[0, l], hw_ref[...],
                            preferred_element_type=f32)
        h = jnp.maximum(agg, 0.0)          # (GN, H) f32

    # attention head: one fused matmul over the staged [h ; er]
    ha_ref[:, :H] = h.astype(cd)
    a = jnp.tanh(
        jnp.dot(ha_ref[...], w_attn_ref[...], preferred_element_type=f32)
        + b_attn)                          # (GN, H) f32

    # logits, per-graph softmax, fused readout + scoring (no (G,H) intermediate)
    a3 = a.reshape(G, N, H)
    h3 = h.reshape(G, N, H)
    s = jnp.sum(a3 * w_as, axis=-1, keepdims=True) + b_as        # (G, N, 1)
    t = jnp.sum(h3 * w_sc, axis=-1, keepdims=True)               # (G, N, 1)
    m = jnp.max(s, axis=1, keepdims=True)                        # (G, 1, 1)
    e = jnp.exp(s - m)
    denom = jnp.sum(e, axis=1, keepdims=True)
    alpha = e / denom                                            # exact softmax
    score = jnp.sum(alpha * t, axis=1) + b_sc                    # (G, 1)
    out_ref[...] = score[None].astype(out_ref.dtype)             # (1, G, 1)


# ------------------------------ wrapper --------------------------------------
def _padded_tile_bytes(shape, dtype):
    """Bytes of one VMEM tile with (sublane, lane) padding applied."""
    isz = jnp.dtype(dtype).itemsize
    sub_mult = max(8 * 4 // isz, 8)          # 8 (f32), 16 (bf16), 32 (int8)
    dims = (1, 1) + tuple(int(d) for d in shape)
    lead = 1
    for d in dims[:-2]:
        lead *= d
    sl = -(-dims[-2] // sub_mult) * sub_mult
    ln = -(-dims[-1] // 128) * 128
    return lead * sl * ln * isz


def rasg_forward(feat, er, adj_basis, params, *, G, compute_dtype=jnp.bfloat16):
    """feat: (B,N,Fin), er: (B,N,Frel), adj_basis: (B,L,NB,N,N). Returns (B,)."""
    B, N, Fin = feat.shape
    Frel = er.shape[-1]
    _, L, NB, _, _ = adj_basis.shape
    H = params["w_loop"].shape[-1]
    assert B % G == 0, "batch must be divisible by graphs-per-step G"
    Bg = B // G
    GN = G * N
    cd = compute_dtype
    f32 = jnp.float32

    # per-step node features: [feat | er] fused along the contraction axis
    x_in = jnp.concatenate([feat, er], axis=-1).reshape(
        Bg, GN, Fin + Frel).astype(cd)

    # block-diagonal, basis-folded adjacency, built directly in bf16, with the
    # NB basis blocks concatenated along the contraction axis:
    #   abd[b, l, v, k*GN + u] = (sum_r coeff[l,r,k] A_r)[v%N, u%N] of graph(v)
    #                            if graph(v) == graph(u) else 0
    ab = adj_basis.astype(cd).reshape(Bg, G, L, NB, N, N)
    abd = jnp.zeros((Bg, L, GN, NB, GN), cd)
    for g in range(G):
        blk = jnp.moveaxis(ab[:, g], 2, 3)                 # (Bg, L, N, NB, N)
        abd = abd.at[:, :, g * N:(g + 1) * N, :, g * N:(g + 1) * N].set(blk)
    abd = abd.reshape(Bg, L, GN, NB * GN)
    # TODO(synk): (G-1)/G of this tile is structural zeros; switch to a
    #             gather/segment-sum contraction for large N.

    # fused MXU weights (compute dtype)
    w_in = jnp.concatenate([params["w_in_f"], params["w_in_r"]],
                           axis=0).astype(cd)                       # (Fin+Frel, H)
    stacked = jnp.concatenate([params["w_loop"][:, None], params["basis"]],
                              axis=1)                               # (L, NB+1, H, H)
    w_layer = jnp.moveaxis(stacked, 1, 2).reshape(
        L, H, (NB + 1) * H).astype(cd)                              # (L, H, (NB+1)*H)
    w_attn = jnp.concatenate([params["w_attn_h"], params["w_attn_r"]],
                             axis=0).astype(cd)                     # (H+Frel, H)

    # packed small f32 parameters: one (L+6, H) slab
    P = L + 6
    pslab = jnp.zeros((P, H), f32)
    pslab = pslab.at[0].set(params["b_in"][0])
    pslab = pslab.at[1:1 + L].set(params["b_conv"][:, 0, :])
    pslab = pslab.at[L + 1].set(params["b_attn"][0])
    pslab = pslab.at[L + 2].set(params["w_as_row"][0])
    pslab = pslab.at[L + 3].set(params["w_sc_row"][0])
    pslab = pslab.at[L + 4, 0].set(params["b_as"][0, 0])
    pslab = pslab.at[L + 5, 0].set(params["b_sc"][0, 0])

    in_specs = [
        pl.BlockSpec((1, GN, Fin + Frel), lambda gi: (gi, 0, 0)),
        pl.BlockSpec((1, L, GN, NB * GN), lambda gi: (gi, 0, 0, 0)),
        pl.BlockSpec((Fin + Frel, H), lambda gi: (0, 0)),
        pl.BlockSpec((L, H, (NB + 1) * H), lambda gi: (0, 0, 0)),
        pl.BlockSpec((H + Frel, H), lambda gi: (0, 0)),
        pl.BlockSpec((P, H), lambda gi: (0, 0)),
    ]
    out_spec = pl.BlockSpec((1, G, 1), lambda gi: (gi, 0, 0))
    scratch_shapes = [
        pltpu.VMEM((NB * GN, H), cd),          # row-stacked hc @ B_k
        pltpu.VMEM((GN, H + Frel), cd),        # staged [h ; er] attention input
    ]

    # VMEM request: padded tiles, x2 for double buffering, capped for v7x.
    step_bytes = (_padded_tile_bytes((1, GN, Fin + Frel), cd)
                  + _padded_tile_bytes((1, L, GN, NB * GN), cd)
                  + _padded_tile_bytes((1, G, 1), f32))
    weight_bytes = (_padded_tile_bytes((Fin + Frel, H), cd)
                    + _padded_tile_bytes((L, H, (NB + 1) * H), cd)
                    + _padded_tile_bytes((H + Frel, H), cd)
                    + _padded_tile_bytes((P, H), f32))
    scratch_bytes = (_padded_tile_bytes((NB * GN, H), cd)
                     + _padded_tile_bytes((GN, H + Frel), cd))
    need = 2 * step_bytes + 2 * weight_bytes + scratch_bytes
    vmem_limit = int(min(48 * 1024 * 1024, max(32 * 1024 * 1024, 2 * need)))

    out = pl.pallas_call(
        functools.partial(rasg_kernel, G=G, L=L, NB=NB, H=H, Fin=Fin),
        out_shape=jax.ShapeDtypeStruct((Bg, G, 1), f32),
        grid=(Bg,),
        in_specs=in_specs,
        out_specs=out_spec,
        scratch_shapes=scratch_shapes,
        compiler_params=pltpu.CompilerParams(
            dimension_semantics=("parallel",),
            vmem_limit_bytes=vmem_limit,
        ),
    )(x_in, abd, w_in, w_layer, w_attn, pslab)
    return out.reshape(B)


# --------------------------- pure-JAX reference -------------------------------
def rasg_reference(feat, er, adj_basis, params, compute_dtype=jnp.float32):
    """Per-graph reference mirroring the module (and the kernel's mixed precision)."""
    cd = compute_dtype
    f32 = jnp.float32

    def mm(a, b):
        return jnp.dot(a.astype(cd), b.astype(cd), preferred_element_type=f32)

    B = feat.shape[0]
    L, NB = params["basis"].shape[:2]
    outs = []
    for b in range(B):
        f = feat[b]
        e = er[b]
        h = jax.nn.relu(mm(f, params["w_in_f"]) + mm(e, params["w_in_r"])
                        + params["b_in"])
        for l in range(L):
            agg = mm(h, params["w_loop"][l]) + params["b_conv"][l]
            for k in range(NB):
                hw = mm(h, params["basis"][l, k]).astype(cd)
                agg = agg + mm(adj_basis[b, l, k], hw)
            h = jax.nn.relu(agg)
        a = jnp.tanh(mm(h, params["w_attn_h"]) + mm(e, params["w_attn_r"])
                     + params["b_attn"])
        s = jnp.sum(a * params["w_as_row"], axis=-1) + params["b_as"][0, 0]   # (N,)
        alpha = jax.nn.softmax(s, axis=0)
        z = jnp.sum(h * alpha[:, None], axis=0)                               # (H,)
        score = jnp.sum(z * params["w_sc_row"][0]) + params["b_sc"][0, 0]
        outs.append(score)
    return jnp.stack(outs)


# -------------------------------- main ----------------------------------------
if __name__ == "__main__":
    # small shapes consistent with the module
    B = 16           # graphs in the batch
    N = 16           # nodes per graph
    E = 40           # edges per graph
    Fin = 8          # in_feat_dim
    Frel = 8         # rel_emb_dim
    H = 32           # hidden_dim
    R = 4            # num_rels
    NB = 2           # num_bases
    L = 2            # num_layers
    # G*N = 128 MXU rows per step; Bg = B//G = 2 keeps two grid steps for
    # dual-TensorCore chips.  On single-TC chips (v5e/v6e), G=16 (Bg=1) would
    # fill 256 MXU rows at the cost of a larger block-diagonal adjacency.
    G = 8

    key = jax.random.PRNGKey(0)
    ks = jax.random.split(key, 20)

    # ---- deterministic parameter init (shapes follow the module __init__) ----
    rel_emb_tbl = 0.1 * jax.random.normal(ks[0], (R, Frel), jnp.float32)
    w_in = 0.1 * jax.random.normal(ks[1], (Fin + Frel, H), jnp.float32)
    b_in = 0.1 * jax.random.normal(ks[2], (1, H), jnp.float32)
    # RelGraphConv basis regularizer: W_r = sum_k coeff[r, k] * basis[k]
    basis = 0.1 * jax.random.normal(ks[3], (L, NB, H, H), jnp.float32)
    coeff = 0.1 * jax.random.normal(ks[4], (L, R, NB), jnp.float32)
    w_loop = 0.1 * jax.random.normal(ks[5], (L, H, H), jnp.float32)
    b_conv = 0.1 * jax.random.normal(ks[6], (L, 1, H), jnp.float32)
    w_attn = 0.1 * jax.random.normal(ks[7], (H + Frel, H), jnp.float32)
    b_attn = 0.1 * jax.random.normal(ks[8], (1, H), jnp.float32)
    w_as = 0.1 * jax.random.normal(ks[9], (H, 1), jnp.float32)
    b_as = 0.1 * jax.random.normal(ks[10], (1, 1), jnp.float32)
    w_sc = 0.1 * jax.random.normal(ks[11], (H, 1), jnp.float32)
    b_sc = 0.1 * jax.random.normal(ks[12], (1, 1), jnp.float32)

    params = dict(
        w_in_f=w_in[:Fin], w_in_r=w_in[Fin:], b_in=b_in,
        basis=basis, w_loop=w_loop, b_conv=b_conv,
        w_attn_h=w_attn[:H], w_attn_r=w_attn[H:], b_attn=b_attn,
        w_as_row=w_as.T, b_as=b_as, w_sc_row=w_sc.T, b_sc=b_sc,
    )

    # ---- deterministic synthetic batched graph data ----
    feat = jax.random.normal(ks[13], (B, N, Fin), jnp.float32)      # node 'feat'
    qrels = jax.random.randint(ks[14], (B, N), 0, R)                # node 'query_rel'
    src = jax.random.randint(ks[15], (B, E), 0, N)                  # edge sources
    dst = jax.random.randint(ks[16], (B, E), 0, N)                  # edge dests
    etypes = jax.random.randint(ks[17], (B, E), 0, R)               # edge 'type'

    # glue: embedding lookup + dense per-relation adjacency (exact for sum agg)
    er = jnp.take(rel_emb_tbl, qrels, axis=0)                       # (B, N, Frel)
    bidx = jnp.repeat(jnp.arange(B), E)
    adj = jnp.zeros((B, R, N, N), jnp.float32).at[
        bidx, etypes.reshape(-1), dst.reshape(-1), src.reshape(-1)
    ].add(1.0)
    # fold basis coefficients into the adjacency: NB (<R) adjacency blocks/layer
    adj_basis = jnp.einsum("lrk,brvu->blkvu", coeff, adj)           # (B, L, NB, N, N)

    scores = jax.block_until_ready(
        rasg_forward(feat, er, adj_basis, params, G=G,
                     compute_dtype=jnp.bfloat16))
    ref_bf16 = jax.block_until_ready(
        rasg_reference(feat, er, adj_basis, params, compute_dtype=jnp.bfloat16))
    ref_f32 = jax.block_until_ready(
        rasg_reference(feat, er, adj_basis, params, compute_dtype=jnp.float32))

    assert scores.shape == (B,)
    assert jnp.all(jnp.isfinite(scores))
    # tight check against the matched mixed-precision reference
    assert jnp.allclose(scores, ref_bf16, rtol=1e-2, atol=5e-3), (scores, ref_bf16)
    # loose sanity check against the full-f32 (module-faithful) reference
    assert jnp.allclose(scores, ref_f32, rtol=1e-1, atol=5e-2), (scores, ref_f32)
    print("KERNEL_OK")
</pallas_src>

<mosaic_0001>
module attributes {stable_mosaic.version = 11 : i64} {
  func.func @rasg_kernel(%arg0: i32, %arg1: memref<1x128x16xbf16, #tpu.memory_space<vmem>>, %arg2: memref<1x2x128x256xbf16, #tpu.memory_space<vmem>>, %arg3: memref<16x32xbf16, #tpu.memory_space<vmem>>, %arg4: memref<2x32x96xbf16, #tpu.memory_space<vmem>>, %arg5: memref<40x32xbf16, #tpu.memory_space<vmem>>, %arg6: memref<8x32xf32, #tpu.memory_space<vmem>>, %arg7: memref<1x8x1xf32, #tpu.memory_space<vmem>>, %arg8: memref<256x32xbf16, #tpu.memory_space<vmem>>, %arg9: memref<128x40xbf16, #tpu.memory_space<vmem>>) attributes {dimension_semantics = [#tpu.dimension_semantics<parallel>], iteration_bounds = array<i64: 2>, scalar_prefetch = 0 : i64, scratch_operands = 2 : i64, tpu.core_type = #tpu.core_type<tc>, window_params = [{transform_indices = @transform_0, window_bounds = array<i64: 1, 128, 16>}, {transform_indices = @transform_1, window_bounds = array<i64: 1, 2, 128, 256>}, {pipeline_mode = #tpu.pipeline_mode<synchronous>, transform_indices = @transform_2, window_bounds = array<i64: 16, 32>}, {pipeline_mode = #tpu.pipeline_mode<synchronous>, transform_indices = @transform_3, window_bounds = array<i64: 2, 32, 96>}, {pipeline_mode = #tpu.pipeline_mode<synchronous>, transform_indices = @transform_4, window_bounds = array<i64: 40, 32>}, {pipeline_mode = #tpu.pipeline_mode<synchronous>, transform_indices = @transform_5, window_bounds = array<i64: 8, 32>}, {transform_indices = @transform_6, window_bounds = array<i64: 1, 8, 1>}]} {
    %c0 = arith.constant 0 : index
    %c0_0 = arith.constant 0 : index
    %c0_1 = arith.constant 0 : index
    %0 = vector.load %arg1[%c0, %c0_0, %c0_1] : memref<1x128x16xbf16, #tpu.memory_space<vmem>>, vector<1x128x16xbf16>
    %1 = vector.shape_cast %0 : vector<1x128x16xbf16> to vector<128x16xbf16>
    %2 = vector.extract_strided_slice %1 {offsets = [0, 8], sizes = [128, 8], strides = [1, 1]} : vector<128x16xbf16> to vector<128x8xbf16>
    %c0_2 = arith.constant 0 : index
    %c0_3 = arith.constant 0 : index
    %3 = vector.load %arg6[%c0_2, %c0_3] : memref<8x32xf32, #tpu.memory_space<vmem>>, vector<1x32xf32>
    %c3 = arith.constant 3 : index
    %c0_4 = arith.constant 0 : index
    %4 = vector.load %arg6[%c3, %c0_4] : memref<8x32xf32, #tpu.memory_space<vmem>>, vector<1x32xf32>
    %c4 = arith.constant 4 : index
    %c0_5 = arith.constant 0 : index
    %5 = vector.load %arg6[%c4, %c0_5] : memref<8x32xf32, #tpu.memory_space<vmem>>, vector<1x32xf32>
    %c5 = arith.constant 5 : index
    %c0_6 = arith.constant 0 : index
    %6 = vector.load %arg6[%c5, %c0_6] : memref<8x32xf32, #tpu.memory_space<vmem>>, vector<1x32xf32>
    %c6 = arith.constant 6 : index
    %c0_7 = arith.constant 0 : index
    %7 = vector.load %arg6[%c6, %c0_7] : memref<8x32xf32, #tpu.memory_space<vmem>>, vector<1x1xf32>
    %c7 = arith.constant 7 : index
    %c0_8 = arith.constant 0 : index
    %8 = vector.load %arg6[%c7, %c0_8] : memref<8x32xf32, #tpu.memory_space<vmem>>, vector<1x1xf32>
    %c0_9 = arith.constant 0 : index
    %c32 = arith.constant 32 : index
    %9 = vector.load %arg9[%c0_9, %c32] : memref<128x40xbf16, #tpu.memory_space<vmem>>, vector<128x8xbf16>
    tpu.vector_store %arg9[%c0_9, %c32], %2 {strides = array<i32>} : memref<128x40xbf16, #tpu.memory_space<vmem>>, vector<128x8xbf16>,
    %c0_10 = arith.constant 0 : index
    %c0_11 = arith.constant 0 : index
    %10 = vector.load %arg3[%c0_10, %c0_11] : memref<16x32xbf16, #tpu.memory_space<vmem>>, vector<16x32xbf16>
    %cst = arith.constant dense<0.000000e+00> : vector<128x32xf32>
    %11 = tpu.matmul %1, %10, %cst {dimension_numbers = #tpu.dot_dimension_numbers<[1], [0], [0], [1], [0, 0, 1, 1], [], []>} : vector<128x16xbf16>, vector<16x32xbf16>, vector<128x32xf32> -> vector<128x32xf32>
    %12 = vector.broadcast %3 : vector<1x32xf32> to vector<128x32xf32>
    %13 = arith.addf %11, %12 : vector<128x32xf32>
    %cst_12 = arith.constant 0.000000e+00 : f32
    %14 = vector.broadcast %cst_12 : f32 to vector<128x32xf32>
    %15 = arith.maximumf %13, %14 : vector<128x32xf32>
    %16 = arith.truncf %15 : vector<128x32xf32> to vector<128x32xbf16>
    %c0_13 = arith.constant 0 : index
    %c0_14 = arith.constant 0 : index
    %c0_15 = arith.constant 0 : index
    %17 = vector.load %arg4[%c0_13, %c0_14, %c0_15] : memref<2x32x96xbf16, #tpu.memory_space<vmem>>, vector<1x32x96xbf16>
    %18 = vector.shape_cast %17 : vector<1x32x96xbf16> to vector<32x96xbf16>
    %cst_16 = arith.constant dense<0.000000e+00> : vector<128x96xf32>
    %19 = tpu.matmul %16, %18, %cst_16 {dimension_numbers = #tpu.dot_dimension_numbers<[1], [0], [0], [1], [0, 0, 1, 1], [], []>} : vector<128x32xbf16>, vector<32x96xbf16>, vector<128x96xf32> -> vector<128x96xf32>
    %20 = vector.extract_strided_slice %19 {offsets = [0, 0], sizes = [128, 32], strides = [1, 1]} : vector<128x96xf32> to vector<128x32xf32>
    %c1 = arith.constant 1 : index
    %c0_17 = arith.constant 0 : index
    %21 = vector.load %arg6[%c1, %c0_17] : memref<8x32xf32, #tpu.memory_space<vmem>>, vector<1x32xf32>
    %22 = vector.broadcast %21 : vector<1x32xf32> to vector<128x32xf32>
    %23 = arith.addf %20, %22 : vector<128x32xf32>
    %24 = vector.extract_strided_slice %19 {offsets = [0, 32], sizes = [128, 32], strides = [1, 1]} : vector<128x96xf32> to vector<128x32xf32>
    %25 = arith.truncf %24 : vector<128x32xf32> to vector<128x32xbf16>
    %c0_18 = arith.constant 0 : index
    %c0_19 = arith.constant 0 : index
    %26 = vector.load %arg8[%c0_18, %c0_19] : memref<256x32xbf16, #tpu.memory_space<vmem>>, vector<128x32xbf16>
    tpu.vector_store %arg8[%c0_18, %c0_19], %25 {strides = array<i32>} : memref<256x32xbf16, #tpu.memory_space<vmem>>, vector<128x32xbf16>,
    %27 = vector.extract_strided_slice %19 {offsets = [0, 64], sizes = [128, 32], strides = [1, 1]} : vector<128x96xf32> to vector<128x32xf32>
    %28 = arith.truncf %27 : vector<128x32xf32> to vector<128x32xbf16>
    %c128 = arith.constant 128 : index
    %c0_20 = arith.constant 0 : index
    %29 = vector.load %arg8[%c128, %c0_20] : memref<256x32xbf16, #tpu.memory_space<vmem>>, vector<128x32xbf16>
    tpu.vector_store %arg8[%c128, %c0_20], %28 {strides = array<i32>} : memref<256x32xbf16, #tpu.memory_space<vmem>>, vector<128x32xbf16>,
    %c0_21 = arith.constant 0 : index
    %c0_22 = arith.constant 0 : index
    %c0_23 = arith.constant 0 : index
    %c0_24 = arith.constant 0 : index
    %30 = vector.load %arg2[%c0_21, %c0_22, %c0_23, %c0_24] : memref<1x2x128x256xbf16, #tpu.memory_space<vmem>>, vector<1x1x128x256xbf16>
    %31 = vector.shape_cast %30 : vector<1x1x128x256xbf16> to vector<128x256xbf16>
    %c0_25 = arith.constant 0 : index
    %c0_26 = arith.constant 0 : index
    %32 = vector.load %arg8[%c0_25, %c0_26] : memref<256x32xbf16, #tpu.memory_space<vmem>>, vector<256x32xbf16>
    %cst_27 = arith.constant dense<0.000000e+00> : vector<128x32xf32>
    %33 = tpu.matmul %31, %32, %cst_27 {dimension_numbers = #tpu.dot_dimension_numbers<[1], [0], [0], [1], [0, 0, 1, 1], [], []>} : vector<128x256xbf16>, vector<256x32xbf16>, vector<128x32xf32> -> vector<128x32xf32>
    %34 = arith.addf %23, %33 : vector<128x32xf32>
    %cst_28 = arith.constant 0.000000e+00 : f32
    %35 = vector.broadcast %cst_28 : f32 to vector<128x32xf32>
    %36 = arith.maximumf %34, %35 : vector<128x32xf32>
    %37 = arith.truncf %36 : vector<128x32xf32> to vector<128x32xbf16>
    %c1_29 = arith.constant 1 : index
    %c0_30 = arith.constant 0 : index
    %c0_31 = arith.constant 0 : index
    %38 = vector.load %arg4[%c1_29, %c0_30, %c0_31] : memref<2x32x96xbf16, #tpu.memory_space<vmem>>, vector<1x32x96xbf16>
    %39 = vector.shape_cast %38 : vector<1x32x96xbf16> to vector<32x96xbf16>
    %cst_32 = arith.constant dense<0.000000e+00> : vector<128x96xf32>
    %40 = tpu.matmul %37, %39, %cst_32 {dimension_numbers = #tpu.dot_dimension_numbers<[1], [0], [0], [1], [0, 0, 1, 1], [], []>} : vector<128x32xbf16>, vector<32x96xbf16>, vector<128x96xf32> -> vector<128x96xf32>
    %41 = vector.extract_strided_slice %40 {offsets = [0, 0], sizes = [128, 32], strides = [1, 1]} : vector<128x96xf32> to vector<128x32xf32>
    %c2 = arith.constant 2 : index
    %c0_33 = arith.constant 0 : index
    %42 = vector.load %arg6[%c2, %c0_33] : memref<8x32xf32, #tpu.memory_space<vmem>>, vector<1x32xf32>
    %43 = vector.broadcast %42 : vector<1x32xf32> to vector<128x32xf32>
    %44 = arith.addf %41, %43 : vector<128x32xf32>
    %45 = vector.extract_strided_slice %40 {offsets = [0, 32], sizes = [128, 32], strides = [1, 1]} : vector<128x96xf32> to vector<128x32xf32>
    %46 = arith.truncf %45 : vector<128x32xf32> to vector<128x32xbf16>
    %c0_34 = arith.constant 0 : index
    %c0_35 = arith.constant 0 : index
    %47 = vector.load %arg8[%c0_34, %c0_35] : memref<256x32xbf16, #tpu.memory_space<vmem>>, vector<128x32xbf16>
    tpu.vector_store %arg8[%c0_34, %c0_35], %46 {strides = array<i32>} : memref<256x32xbf16, #tpu.memory_space<vmem>>, vector<128x32xbf16>,
    %48 = vector.extract_strided_slice %40 {offsets = [0, 64], sizes = [128, 32], strides = [1, 1]} : vector<128x96xf32> to vector<128x32xf32>
    %49 = arith.truncf %48 : vector<128x32xf32> to vector<128x32xbf16>
    %c128_36 = arith.constant 128 : index
    %c0_37 = arith.constant 0 : index
    %50 = vector.load %arg8[%c128_36, %c0_37] : memref<256x32xbf16, #tpu.memory_space<vmem>>, vector<128x32xbf16>
    tpu.vector_store %arg8[%c128_36, %c0_37], %49 {strides = array<i32>} : memref<256x32xbf16, #tpu.memory_space<vmem>>, vector<128x32xbf16>,
    %c0_38 = arith.constant 0 : index
    %c1_39 = arith.constant 1 : index
    %c0_40 = arith.constant 0 : index
    %c0_41 = arith.constant 0 : index
    %51 = vector.load %arg2[%c0_38, %c1_39, %c0_40, %c0_41] : memref<1x2x128x256xbf16, #tpu.memory_space<vmem>>, vector<1x1x128x256xbf16>
    %52 = vector.shape_cast %51 : vector<1x1x128x256xbf16> to vector<128x256xbf16>
    %c0_42 = arith.constant 0 : index
    %c0_43 = arith.constant 0 : index
    %53 = vector.load %arg8[%c0_42, %c0_43] : memref<256x32xbf16, #tpu.memory_space<vmem>>, vector<256x32xbf16>
    %cst_44 = arith.constant dense<0.000000e+00> : vector<128x32xf32>
    %54 = tpu.matmul %52, %53, %cst_44 {dimension_numbers = #tpu.dot_dimension_numbers<[1], [0], [0], [1], [0, 0, 1, 1], [], []>} : vector<128x256xbf16>, vector<256x32xbf16>, vector<128x32xf32> -> vector<128x32xf32>
    %55 = arith.addf %44, %54 : vector<128x32xf32>
    %cst_45 = arith.constant 0.000000e+00 : f32
    %56 = vector.broadcast %cst_45 : f32 to vector<128x32xf32>
    %57 = arith.maximumf %55, %56 : vector<128x32xf32>
    %58 = arith.truncf %57 : vector<128x32xf32> to vector<128x32xbf16>
    %c0_46 = arith.constant 0 : index
    %c0_47 = arith.constant 0 : index
    %59 = vector.load %arg9[%c0_46, %c0_47] : memref<128x40xbf16, #tpu.memory_space<vmem>>, vector<128x32xbf16>
    tpu.vector_store %arg9[%c0_46, %c0_47], %58 {strides = array<i32>} : memref<128x40xbf16, #tpu.memory_space<vmem>>, vector<128x32xbf16>,
    %c0_48 = arith.constant 0 : index
    %c0_49 = arith.constant 0 : index
    %60 = vector.load %arg9[%c0_48, %c0_49] : memref<128x40xbf16, #tpu.memory_space<vmem>>, vector<128x40xbf16>
    %c0_50 = arith.constant 0 : index
    %c0_51 = arith.constant 0 : index
    %61 = vector.load %arg5[%c0_50, %c0_51] : memref<40x32xbf16, #tpu.memory_space<vmem>>, vector<40x32xbf16>
    %cst_52 = arith.constant dense<0.000000e+00> : vector<128x32xf32>
    %62 = tpu.matmul %60, %61, %cst_52 {dimension_numbers = #tpu.dot_dimension_numbers<[1], [0], [0], [1], [0, 0, 1, 1], [], []>} : vector<128x40xbf16>, vector<40x32xbf16>, vector<128x32xf32> -> vector<128x32xf32>
    %63 = vector.broadcast %4 : vector<1x32xf32> to vector<128x32xf32>
    %64 = arith.addf %62, %63 : vector<128x32xf32>
    %65 = math.tanh %64 : vector<128x32xf32>
    %66 = vector.shape_cast %65 : vector<128x32xf32> to vector<8x16x32xf32>
    %67 = vector.shape_cast %57 : vector<128x32xf32> to vector<8x16x32xf32>
    %68 = vector.shape_cast %5 : vector<1x32xf32> to vector<1x1x32xf32>
    %69 = vector.broadcast %68 : vector<1x1x32xf32> to vector<8x16x32xf32>
    %70 = arith.mulf %66, %69 : vector<8x16x32xf32>
    %cst_53 = arith.constant dense<0.000000e+00> : vector<8x16xf32>
    %71 = vector.multi_reduction <add>, %70, %cst_53 [2] : vector<8x16x32xf32> to vector<8x16xf32>
    %72 = vector.shape_cast %71 : vector<8x16xf32> to vector<8x16x1xf32>
    %73 = vector.shape_cast %7 : vector<1x1xf32> to vector<1x1x1xf32>
    %74 = vector.broadcast %73 : vector<1x1x1xf32> to vector<8x16x1xf32>
    %75 = arith.addf %72, %74 : vector<8x16x1xf32>
    %76 = vector.shape_cast %6 : vector<1x32xf32> to vector<1x1x32xf32>
    %77 = vector.broadcast %76 : vector<1x1x32xf32> to vector<8x16x32xf32>
    %78 = arith.mulf %67, %77 : vector<8x16x32xf32>
    %cst_54 = arith.constant dense<0.000000e+00> : vector<8x16xf32>
    %79 = vector.multi_reduction <add>, %78, %cst_54 [2] : vector<8x16x32xf32> to vector<8x16xf32>
    %80 = vector.shape_cast %79 : vector<8x16xf32> to vector<8x16x1xf32>
    %cst_55 = arith.constant dense<0xFF800000> : vector<8x1xf32>
    %81 = vector.multi_reduction <maximumf>, %75, %cst_55 [1] : vector<8x16x1xf32> to vector<8x1xf32>
    %82 = vector.shape_cast %81 : vector<8x1xf32> to vector<8x1x1xf32>
    %83 = vector.broadcast %82 : vector<8x1x1xf32> to vector<8x16x1xf32>
    %84 = arith.subf %75, %83 : vector<8x16x1xf32>
    %85 = math.exp %84 : vector<8x16x1xf32>
    %cst_56 = arith.constant dense<0.000000e+00> : vector<8x1xf32>
    %86 = vector.multi_reduction <add>, %85, %cst_56 [1] : vector<8x16x1xf32> to vector<8x1xf32>
    %87 = vector.shape_cast %86 : vector<8x1xf32> to vector<8x1x1xf32>
    %88 = vector.broadcast %87 : vector<8x1x1xf32> to vector<8x16x1xf32>
    %89 = arith.divf %85, %88 : vector<8x16x1xf32>
    %90 = arith.mulf %89, %80 : vector<8x16x1xf32>
    %cst_57 = arith.constant dense<0.000000e+00> : vector<8x1xf32>
    %91 = vector.multi_reduction <add>, %90, %cst_57 [1] : vector<8x16x1xf32> to vector<8x1xf32>
    %92 = vector.broadcast %8 : vector<1x1xf32> to vector<8x1xf32>
    %93 = arith.addf %91, %92 : vector<8x1xf32>
    %94 = vector.shape_cast %93 : vector<8x1xf32> to vector<1x8x1xf32>
    %c0_58 = arith.constant 0 : index
    %c0_59 = arith.constant 0 : index
    %c0_60 = arith.constant 0 : index
    %95 = vector.load %arg7[%c0_58, %c0_59, %c0_60] : memref<1x8x1xf32, #tpu.memory_space<vmem>>, vector<1x8x1xf32>
    tpu.vector_store %arg7[%c0_58, %c0_59, %c0_60], %94 {strides = array<i32>} : memref<1x8x1xf32, #tpu.memory_space<vmem>>, vector<1x8x1xf32>,
    return
  }
  func.func @transform_0(%arg0: i32) -> (i32, i32, i32) {
    %c0_i32 = arith.constant 0 : i32
    %c0_i32_0 = arith.constant 0 : i32
    %c0_i32_1 = arith.constant 0 : i32
    return %arg0, %c0_i32, %c0_i32_0 : i32, i32, i32
  }
  func.func @transform_1(%arg0: i32) -> (i32, i32, i32, i32) {
    %c0_i32 = arith.constant 0 : i32
    %c0_i32_0 = arith.constant 0 : i32
    %c0_i32_1 = arith.constant 0 : i32
    %c0_i32_2 = arith.constant 0 : i32
    return %arg0, %c0_i32, %c0_i32_0, %c0_i32_1 : i32, i32, i32, i32
  }
  func.func @transform_2(%arg0: i32) -> (i32, i32) {
    %c0_i32 = arith.constant 0 : i32
    %c0_i32_0 = arith.constant 0 : i32
    %c0_i32_1 = arith.constant 0 : i32
    return %c0_i32, %c0_i32_0 : i32, i32
  }
  func.func @transform_3(%arg0: i32) -> (i32, i32, i32) {
    %c0_i32 = arith.constant 0 : i32
    %c0_i32_0 = arith.constant 0 : i32
    %c0_i32_1 = arith.constant 0 : i32
    %c0_i32_2 = arith.constant 0 : i32
    return %c0_i32, %c0_i32_0, %c0_i32_1 : i32, i32, i32
  }
  func.func @transform_4(%arg0: i32) -> (i32, i32) {
    %c0_i32 = arith.constant 0 : i32
    %c0_i32_0 = arith.constant 0 : i32
    %c0_i32_1 = arith.constant 0 : i32
    return %c0_i32, %c0_i32_0 : i32, i32
  }
  func.func @transform_5(%arg0: i32) -> (i32, i32) {
    %c0_i32 = arith.constant 0 : i32
    %c0_i32_0 = arith.constant 0 : i32
    %c0_i32_1 = arith.constant 0 : i32
    return %c0_i32, %c0_i32_0 : i32, i32
  }
  func.func @transform_6(%arg0: i32) -> (i32, i32, i32) {
    %c0_i32 = arith.constant 0 : i32
    %c0_i32_0 = arith.constant 0 : i32
    %c0_i32_1 = arith.constant 0 : i32
    return %arg0, %c0_i32, %c0_i32_0 : i32, i32, i32
  }
}

</mosaic_0001>

<bundles_post_ra>
// kernel: tpu_custom_call.1
= control target key start
LH: loop header
LB: loop body
LE: loop exit
PB: predicated region body
PF: predicated region fallthrough
CT: control target
= control target key end

     0   :  { %11 = vsyncpa [#allocation5], 0  ;;  %s4641_s0 = inlined_call_operand.vmem [shape: bf16[2,128,16], index: 0, kind: input, shape index: {}]   ;;  %s4642_s1 = inlined_call_operand.hbm [shape: bf16[2,2,128,256], index: 1, kind: input, shape index: {}]   ;;  %s4643_s2 = inlined_call_operand.vmem [shape: bf16[16,32], index: 2, kind: input, shape index: {}]   ;;  %s4644_s3 = inlined_call_operand.vmem [shape: bf16[2,32,96], index: 3, kind: input, shape index: {}]   ;;  %s4645_s4 = inlined_call_operand.vmem [shape: bf16[40,32], index: 4, kind: input, shape index: {}]   ;;  %s4646_s5 = inlined_call_operand.vmem [shape: f32[8,32], index: 5, kind: input, shape index: {}]   ;;  %s4647_s6 = inlined_call_operand.vmem [shape: f32[2,8,1], index: 6, kind: output, shape index: {}]  }
   0x1   :  { %13 = vsyncpa [#allocation5 + $0x1], 0  ;;  %s3702_s21 = smov 0   ;;  %s3704_s22 = smov 0  }
   0x2   :  { %s3706_s23 = smov 0   ;;  %s3708_s24 = smov 0  }
   0x3 LB: > { %s3721_s25 = sadd.s32 4294967295, %s3659_s24   ;;  %s3724_s26 = sadd.s32 1, %s3659_s24   ;;  %s3659_s24 = sphi %s3708_s24, %s4656_s24   ;;  %s3655_s23 = sphi %s3706_s23, %s4655_s23   ;;  %s3651_s22 = sphi %s3704_s22, %s4654_s22   ;;  %s3647_s21 = sphi %s3702_s21, %s4653_s21  }
   0x4   : > { %s49_s27 = ssub.s32 %s3659_s24, %s3724_s26  ;;  %s52_s28 = sadd.s32 1, %s3655_s23 }
   0x5   : > { %p50_p0 = scmp.eq.s32.totalorder %s49_s27, 0  ;;  %p59_p1 = scmp.ne.s32.totalorder %s3655_s23, %s3651_s22 }
   0x6   : > { %p60_p2 = scmp.eq.s32.totalorder %s3659_s24, 0  ;;  %p65_p3 = scmp.ne.s32.totalorder %s3651_s22, %s3647_s21 }
   0x7   : > { %s3734_s29 = scalar_select %p50_p0, %s3655_s23, %s52_s28  }
   0x8   : > { %p61_p4 = por %p60_p2, %p59_p1  ;;  %p66_p5 = scmp.eq.s32.totalorder %s3721_s25, 0 }
   0x9   : > { %p3359_p6 = scmp.lt.s32.totalorder %s3659_s24, 2  ;;  %s219_s7 = sand.u32 1, %s3655_s23  }
   0xa   : > { %p3738_p7 = por %p66_p5, %p65_p3  ;;  %s2848_s8 = sshll.u32 %s219_s7, 8 }
   0xb   : > { %s3054_s9 = sshll.u32 %s3659_s24, 12  ;;  %s223_s13 = scalar_lea.vmem [#allocation4], %s2848_s8 }
   0xc   : > { %s4649_s30 = scalar_select %p3738_p7, 1, 0 }
   0xd   : > { %s3747_s12 = scalar_lea.hbm %s4642_s1, %s3054_s9  ;;  %s230_s14 = sshll.u32 %s223_s13, 4  ;;  %s3749_s14 = int_to_ptr.vmem [resolvable:$true] %s230_s14 }
   0xe   : > { %p3751_p8 = pnand %p3359_p6, %p61_p4  ;;  %s3756_s16 = scalar_lea.sflag [#allocation5], %s219_s7 }
   0xf   : > { %s3597_s17 = scalar_lea.hbm %s3747_s12, 4096  ;;  %s3602_s20 = scalar_lea.hbm %s4642_s1, 8192 }
  0x10   : > { %p3598_p10 = scmp.ne.s32.totalorder %s3747_s12, %s3597_s17  ;;  %p3599_p11 = pneg %p3751_p8 }
  0x11   : > { %p3603_p0 = scmp.lt.s32.totalorder %s3747_s12, %s4642_s1  ;;  %p3604_p1 = scmp.lt.s32.totalorder %s3602_s20, %s3597_s17 }
  0x12   : > { %p3600_p12 = pnand %p3599_p11, %p3598_p10 }
  0x13   : > { %p3605_p2 = por %p3604_p1, %p3603_p0 }
  0x14   : > { %p3601_p13 = pneg %p3600_p12 }
  0x16   : > { %p3606_p3 = pnand %p3605_p2, %p3601_p13 }
  0x18   : > { %3609 = shalt.err (!%p3606_p3)
}
  0x19   : > { %s3610_s28 = scalar_lea.vmem %s3749_s14, 4096  ;;  %s3661_s7 = smov [#allocation4]  }
  0x1a   : > { %p3611_p4 = scmp.ne.s32.totalorder %s3749_s14, %s3610_s28  ;;  %s3615_s8 = sshll.u32 %s3661_s7, 4  ;;  %s3616_s8 = int_to_ptr.vmem [resolvable:$false] %s3615_s8 }
  0x1b   : > { %s3617_s9 = scalar_lea.vmem %s3616_s8, 8192  ;;  %p3618_p10 = scmp.lt.s32.totalorder %s3749_s14, %s3616_s8 }
  0x1c   : > { %p3613_p5 = pnand %p3611_p4, %p3599_p11  ;;  %p3619_p12 = scmp.lt.s32.totalorder %s3617_s9, %s3610_s28 }
  0x1e   : > { %p3614_p6 = pneg %p3613_p5  ;;  %p3620_p9 = por %p3619_p12, %p3618_p10 }
  0x20   : > { %p3621_p7 = pnand %p3620_p9, %p3614_p6 }
  0x22   : > { %3624 = shalt.err (!%p3621_p7)
}
  0x23   : > { %s3662_s10 = smov 128   ;;  %s3663_s11 = smov 8  }
  0x24   : > { %3358 = dma.hbm_to_vmem [thread:$0]  (!%p3751_p8), %s3747_s12, 4096, %s3749_s14, %s3756_s16, %s3662_s10, %s3662_s10, %s3663_s11  }
  0x25   : > { %p238_p11 = scmp.lt.s32.totalorder %s3659_s24, 3  ;;  %p4651_p13 = scmp.ge.s32.totalorder %s3659_s24, 1 }
  0x27   : > { %p239_p0 = pnand %p4651_p13, %p238_p11 }
  0x28   : > { %s244_s13 = sand.u32 (!%p239_p0), 1, %s3651_s22   ;;  %p4652_p7 = scmp.ne.s32.totalorder (!%p239_p0), %s4649_s30, 0 }
  0x29   : > { %242 = sbr.rel (%p239_p0) target bundleno = 2009 (0x7d9), region = 44  ;;  %s2852_s17 = sshll.u32 (!%p239_p0), %s244_s13, 8 }
  0x2a   : > { %s245_s18 = scalar_lea.sflag (!%p239_p0), [#allocation5], %s244_s13  ;;  %s3781_s19 = scalar_lea.vmem (!%p239_p0), [#allocation4], %s2852_s17 }
  0x2e   : > { %3642 = dma.done.wait (%p4652_p7), %s245_s18, 4096  }
  0x2f   : > { %3644 = vsyncadd (%p4652_p7), %s245_s18, 4294963200  ;;  %p281_p9 = scmp.lt.s32.totalorder %s3721_s25, 1  ;;  %v3397_v0 = vld [vmem:[%s4643_s2] sm:$0xff]   ;;  %vm430_vm0 = vcmask 130048   ;;  %v3406_v25 = vld [vmem:[%s4644_s3 + $0x8] sm:$0xff]   ;;  %vm592_vm1 = vcmask 261120  }
  0x30   : > { %3272 = vmatprep.subr.bf16.mxu0 %v3397_v0  ;;  %3290 = vmatprep.subr.bf16.mxu1 %v3406_v25  ;;  %v3407_v26 = vld [vmem:[%s4644_s3] sm:$0xff]   ;;  %s3664_s9 = smov 64   ;;  %s3665_s10 = smov 96   ;;  %vm831_vm2 = vcmask 257024   ;;  %vm2147_vm3 = vcmask 1043456   ;;  %vm377_vm4 = vcmask 322816  }
  0x31   : > { %s4658_s25 = smov (!%p281_p9, %s3721_s25), 1  ;;  %3273 = vmatpush3.bf16.msra.mxu0 %v3397_v0  ;;  %3291 = vmatpush3.bf16.msra.mxu1 %v3406_v25  ;;  %v2856_v29 = vld [vmem:[%s4646_s5] ss:$0 sm:$0xff]  ;;  %s3666_s20 = smov 24   ;;  %vm2122_vm5 = vcmask 326656   ;;  %vm2420_vm6 = vcmask 7168  }
  0x32   : > { %s3055_s24 = sshll.u32 %s4658_s25, 6  ;;  %3292 = vmatprep.subr.bf16.mxu1 %v3407_v26  ;;  %vm2746_vm7 = vcmask 1041409   ;;  %vm2749_vm8 = vcmask 1042434   ;;  %vm2752_vm9 = vcmask 1043459   ;;  %vm2755_vm10 = vcmask 1044484   ;;  %s2855_s14 = sshll.u32 %s4658_s25, 3 }
  0x33   : > { %s3795_s15 = scalar_lea.vmem %s4641_s0, %s3055_s24  ;;  %vm2758_vm11 = vcmask 1045509   ;;  %vm2761_vm12 = vcmask 1046534   ;;  %vm2764_vm13 = vcmask 1047559  }
  0x34   : > { %v291_v1 = vld [vmem:[%s3795_s15] sm:$0xf]  ;;  %v292_v2 = vld [vmem:[%s3795_s15 + $0x4] sm:$0xf]  ;;  %v293_v3 = vld [vmem:[%s3795_s15 + $0x8] sm:$0xf] }
  0x35   : > { %v2857_v4 = vcombine.low %v291_v1, %v292_v2  ;;  %v294_v5 = vld [vmem:[%s3795_s15 + $0xc] sm:$0xf]  ;;  %v295_v6 = vld [vmem:[%s3795_s15 + $0x10] sm:$0xf]  ;;  %v296_v7 = vld [vmem:[%s3795_s15 + $0x14] sm:$0xf]  ;;  %3293 = vmatpush3.bf16.msra.mxu1 %v3407_v26 }
  0x36   : > { %v2858_v8 = vcombine.low %v293_v3, %v294_v5  ;;  %v2859_v9 = vcombine.low %v295_v6, %v296_v7  ;;  %v297_v10 = vld [vmem:[%s3795_s15 + $0x18] sm:$0xf]  ;;  %v298_v11 = vld [vmem:[%s3795_s15 + $0x1c] sm:$0xf]  ;;  %v299_v12 = vld [vmem:[%s3795_s15 + $0x20] sm:$0xf] }
  0x37   : > { %3274 = vmatprep.mubr.msk.bf16.mxu0 %vm430_vm0, %v2857_v4  ;;  %v300_v13 = vld [vmem:[%s3795_s15 + $0x24] sm:$0xf]  ;;  %v2860_v14 = vcombine.low %v297_v10, %v298_v11  ;;  %v301_v16 = vld [vmem:[%s3795_s15 + $0x28] sm:$0xf]  ;;  %v302_v17 = vld [vmem:[%s3795_s15 + $0x2c] sm:$0xf] }
  0x38   : > { %3275 = vmatmul.mubr.msk.bf16.vlgmr.msra.gmra.mxu0 %vm430_vm0, %v2858_v8  ;;  %v2861_v15 = vcombine.low %v299_v12, %v300_v13  ;;  %v303_v18 = vld [vmem:[%s3795_s15 + $0x30] sm:$0xf]  ;;  %v304_v19 = vld [vmem:[%s3795_s15 + $0x34] sm:$0xf]  ;;  %v2862_v20 = vcombine.low %v301_v16, %v302_v17  ;;  %v305_v22 = vld [vmem:[%s3795_s15 + $0x38] sm:$0xf] }
  0x39   : > { %3278 = vmatprep.mubr.msk.bf16.mxu0 %vm430_vm0, %v2859_v9  ;;  %v2863_v21 = vcombine.low %v303_v18, %v304_v19  ;;  %v306_v23 = vld [vmem:[%s3795_s15 + $0x3c] sm:$0xf] }
  0x3a   : > { %v2864_v24 = vcombine.low %v305_v22, %v306_v23 }
  0x40   : > { %3279 = vmatmul.mubr.msk.bf16.gmra.mxu0 %vm430_vm0, %v2860_v14 }
  0x41   : > { %3282 = vmatprep.mubr.msk.bf16.mxu0 %vm430_vm0, %v2861_v15 }
  0x48   : > { %3283 = vmatmul.mubr.msk.bf16.gmra.mxu0 %vm430_vm0, %v2862_v20 }
  0x49   : > { %3286 = vmatprep.mubr.msk.bf16.mxu0 %vm430_vm0, %v2863_v21 }
  0x50   : > { %3287 = vmatmul.mubr.msk.bf16.gmra.mxu0 %vm430_vm0, %v2864_v24 }
  0xf8   : > { %v3276_v27 = vpop.f32.mrf.mxu0 }
  0xf9   : > { %v498_v33 = vadd.f32 %v3276_v27, %v2856_v29 }
  0xfa   : > { %v489_v28 = vpop.f32.mrf.mxu0 }
  0xfb   : > { %v490_v31 = vadd.f32 %v2856_v29, %v489_v28  ;;  %v554_v40 = vmax.f32 %v498_v33, 0.0 }
  0xfc   : > { %v3277_v30 = vpop.f32.mrf.mxu0 }
  0xfd   : > { %v501_v32 = vadd.f32 %v3277_v30, %v2856_v29  ;;  %v552_v38 = vmax.f32 %v490_v31, 0.0 }
  0xfe   : > { %v492_v34 = vpop.f32.mrf.mxu0 }
  0xff   : > { %v493_v35 = vadd.f32 %v2856_v29, %v492_v34  ;;  %v555_v36 = vmax.f32 %v501_v32, 0.0 }
 0x100   : > { %v3280_v37 = vpop.f32.mrf.mxu0 }
 0x101   : > { %v553_v39 = vmax.f32 %v493_v35, 0.0  ;;  %v569_v43 = vpack.c.bf16 %v555_v36, %v554_v40  ;;  %v514_v47 = vadd.f32 %v3280_v37, %v2856_v29 }
 0x102   : > { %v505_v41 = vpop.f32.mrf.mxu0 }
 0x103   : > { %v568_v42 = vpack.c.bf16 %v553_v39, %v552_v38  ;;  %v506_v45 = vadd.f32 %v2856_v29, %v505_v41  ;;  %v558_v54 = vmax.f32 %v514_v47, 0.0 }
 0x104   : > { %v3281_v44 = vpop.f32.mrf.mxu0 }
 0x105   : > { %v517_v46 = vadd.f32 %v3281_v44, %v2856_v29  ;;  %3294 = vmatprep.mubr.msk.bf16.mxu1 %vm592_vm1, %v568_v42  ;;  %v556_v52 = vmax.f32 %v506_v45, 0.0 }
 0x106   : > { %v508_v48 = vpop.f32.mrf.mxu0  ;;  %3295 = vmatmul.mubr.msk.bf16.vlgmr.msra.gmra.mxu1 %vm592_vm1, %v569_v43 }
 0x107   : > { %v509_v49 = vadd.f32 %v2856_v29, %v508_v48  ;;  %v559_v50 = vmax.f32 %v517_v46, 0.0 }
 0x108   : > { %v3284_v51 = vpop.f32.mrf.mxu0 }
 0x109   : > { %v557_v53 = vmax.f32 %v509_v49, 0.0  ;;  %v571_v57 = vpack.c.bf16 %v559_v50, %v558_v54  ;;  %v530_v61 = vadd.f32 %v3284_v51, %v2856_v29 }
 0x10a   : > { %v521_v55 = vpop.f32.mrf.mxu0 }
 0x10b   : > { %v570_v56 = vpack.c.bf16 %v557_v53, %v556_v52  ;;  %v522_v59 = vadd.f32 %v2856_v29, %v521_v55  ;;  %v562_v4 = vmax.f32 %v530_v61, 0.0  ;;  %v3426_v52 = vld [vmem:[%s3781_s19 + $0x4] ss:$8 sps:$4 sm:$0xff]  }
 0x10c   : > { %v3285_v58 = vpop.f32.mrf.mxu0  ;;  %1168 = vmatprep.mubr.bf16.mxu0 %v3426_v52 }
 0x10d   : > { %v533_v60 = vadd.f32 %v3285_v58, %v2856_v29  ;;  %3298 = vmatprep.mubr.msk.bf16.mxu1 %vm592_vm1, %v570_v56  ;;  %v560_v2 = vmax.f32 %v522_v59, 0.0 }
 0x10e   : > { %v524_v62 = vpop.f32.mrf.mxu0  ;;  %3299 = vmatmul.mubr.msk.bf16.gmra.mxu1 %vm592_vm1, %v571_v57 }
 0x10f   : > { %v525_v63 = vadd.f32 %v2856_v29, %v524_v62  ;;  %v563_v0 = vmax.f32 %v533_v60, 0.0 }
 0x110   : > { %v3288_v1 = vpop.f32.mrf.mxu0 }
 0x111   : > { %v561_v3 = vmax.f32 %v525_v63, 0.0  ;;  %v546_v5 = vadd.f32 %v3288_v1, %v2856_v29  ;;  %v573_v9 = vpack.c.bf16 %v563_v0, %v562_v4 }
 0x112   : > { %v537_v6 = vpop.f32.mrf.mxu0 }
 0x113   : > { %v572_v7 = vpack.c.bf16 %v561_v3, %v560_v2  ;;  %v538_v8 = vadd.f32 %v2856_v29, %v537_v6  ;;  %v566_v12 = vmax.f32 %v546_v5, 0.0 }
 0x114   : > { %v3289_v10 = vpop.f32.mrf.mxu0 }
 0x115   : > { %v549_v11 = vadd.f32 %v3289_v10, %v2856_v29  ;;  %3302 = vmatprep.mubr.msk.bf16.mxu1 %vm592_vm1, %v572_v7  ;;  %v564_v14 = vmax.f32 %v538_v8, 0.0 }
 0x116   : > { %v540_v13 = vpop.f32.mrf.mxu0  ;;  %3303 = vmatmul.mubr.msk.bf16.gmra.mxu1 %vm592_vm1, %v573_v9 }
 0x117   : > { %v567_v15 = vmax.f32 %v549_v11, 0.0  ;;  %v541_v16 = vadd.f32 %v2856_v29, %v540_v13 }
 0x119   : > { %v565_v17 = vmax.f32 %v541_v16, 0.0  ;;  %v575_v18 = vpack.c.bf16 %v567_v15, %v566_v12 }
 0x11b   : > { %v574_v19 = vpack.c.bf16 %v565_v17, %v564_v14 }
 0x11d   : > { %3306 = vmatprep.mubr.msk.bf16.mxu1 %vm592_vm1, %v574_v19 }
 0x11e   : > { %3307 = vmatmul.mubr.msk.bf16.gmra.mxu1 %vm592_vm1, %v575_v18 }
 0x1c6   : > { %v3841_v20 = vpop.f32.mrf.mxu1 }
 0x1c7   : > { %v3058_v48 = vpack.c.bf16 %v3841_v20, %v3841_v20 }
 0x1c8   : > { %v3843_v21 = vpop.f32.mrf.mxu1 }
 0x1c9   : > { %v3056_v50 = vpack.c.bf16 %v3843_v21, %v3843_v21 }
 0x1ca   : > { %v3845_v22 = vpop.f32.mrf.mxu1 }
 0x1cb   : > { %v3059_v49 = vpack.c.bf16 %v3845_v22, %v3845_v22 }
 0x1cc   : > { %v3847_v23 = vpop.f32.mrf.mxu1 }
 0x1cd   : > { %v3057_v51 = vpack.c.bf16 %v3847_v23, %v3847_v23 }
 0x1ce   : > { %v3849_v24 = vpop.f32.mrf.mxu1 }
 0x1cf   : > { %v3062_v43 = vpack.c.bf16 %v3849_v24, %v3849_v24 }
 0x1d0   : > { %v3851_v25 = vpop.f32.mrf.mxu1 }
 0x1d1   : > { %v3060_v46 = vpack.c.bf16 %v3851_v25, %v3851_v25 }
 0x1d2   : > { %v3853_v26 = vpop.f32.mrf.mxu1 }
 0x1d3   : > { %v3063_v40 = vpack.c.bf16 %v3853_v26, %v3853_v26 }
 0x1d4   : > { %v3855_v27 = vpop.f32.mrf.mxu1 }
 0x1d5   : > { %v3061_v47 = vpack.c.bf16 %v3855_v27, %v3855_v27 }
 0x1d6   : > { %v3857_v28 = vpop.f32.mrf.mxu1 }
 0x1d7   : > { %v3066_v29 = vpack.c.bf16 %v3857_v28, %v3857_v28 }
 0x1d8   : > { %v3861_v30 = vpop.f32.mrf.mxu1 }
 0x1d9   : > { %868 = vrot.lane.b32.xlu0 %v3066_v29, %s3664_s9  ;;  %v3064_v33 = vpack.c.bf16 %v3861_v30, %v3861_v30 }
 0x1da   : > { %v3864_v31 = vpop.f32.mrf.mxu1 }
 0x1db   : > { %v3067_v32 = vpack.c.bf16 %v3864_v31, %v3864_v31 }
 0x1dc   : > { %v3872_v34 = vpop.f32.mrf.mxu1 }
 0x1dd   : > { %803 = vrot.lane.b32.xlu0 %v3066_v29, %s3665_s10  ;;  %870 = vrot.lane.b32.xlu1 %v3067_v32, %s3664_s9  ;;  %v3065_v35 = vpack.c.bf16 %v3872_v34, %v3872_v34 }
 0x1de   : > { %v3880_v36 = vpop.f32.mrf.mxu1 }
 0x1df   : > { %v3070_v37 = vpack.c.bf16 %v3880_v36, %v3880_v36 }
 0x1e0   : > { %v3886_v38 = vpop.f32.mrf.mxu1 }
 0x1e1   : > { %864 = vrot.lane.b32.xlu0 %v3064_v33, %s3664_s9  ;;  %805 = vrot.lane.b32.xlu1 %v3067_v32, %s3665_s10  ;;  %v3068_v39 = vpack.c.bf16 %v3886_v38, %v3886_v38 }
 0x1e2   : > { %v3894_v41 = vpop.f32.mrf.mxu1 }
 0x1e3   : > { %v3071_v42 = vpack.c.bf16 %v3894_v41, %v3894_v41 }
 0x1e4   : > { %v3904_v44 = vpop.f32.mrf.mxu1 }
 0x1e5   : > { %799 = vrot.lane.b32.xlu0 %v3064_v33, %s3665_s10  ;;  %866 = vrot.lane.b32.xlu1 %v3065_v35, %s3664_s9  ;;  %v3069_v45 = vpack.c.bf16 %v3904_v44, %v3904_v44 }
 0x1e9   : > { %801 = vrot.lane.b32.xlu1 %v3065_v35, %s3665_s10  ;;  %876 = vrot.lane.b32.xlu0 %v3070_v37, %s3664_s9 }
 0x1ed   : > { %811 = vrot.lane.b32.xlu1 %v3070_v37, %s3665_s10  ;;  %872 = vrot.lane.b32.xlu0 %v3068_v39, %s3664_s9 }
 0x1f1   : > { %862 = vrot.lane.b32.xlu1 %v3063_v40, %s3664_s9  ;;  %807 = vrot.lane.b32.xlu0 %v3068_v39, %s3665_s10 }
 0x1f5   : > { %797 = vrot.lane.b32.xlu1 %v3063_v40, %s3665_s10  ;;  %878 = vrot.lane.b32.xlu0 %v3071_v42, %s3664_s9 }
 0x1f9   : > { %813 = vrot.lane.b32.xlu1 %v3071_v42, %s3665_s10  ;;  %860 = vrot.lane.b32.xlu0 %v3062_v43, %s3664_s9 }
 0x1fd   : > { %795 = vrot.lane.b32.xlu0 %v3062_v43, %s3665_s10  ;;  %874 = vrot.lane.b32.xlu1 %v3069_v45, %s3664_s9 }
 0x201   : > { %856 = vrot.lane.b32.xlu0 %v3060_v46, %s3664_s9  ;;  %809 = vrot.lane.b32.xlu1 %v3069_v45, %s3665_s10 }
 0x205   : > { %791 = vrot.lane.b32.xlu0 %v3060_v46, %s3665_s10  ;;  %858 = vrot.lane.b32.xlu1 %v3061_v47, %s3664_s9 }
 0x209   : > { %852 = vrot.lane.b32.xlu0 %v3058_v48, %s3664_s9  ;;  %793 = vrot.lane.b32.xlu1 %v3061_v47, %s3665_s10 }
 0x20d   : > { %787 = vrot.lane.b32.xlu0 %v3058_v48, %s3665_s10  ;;  %854 = vrot.lane.b32.xlu1 %v3059_v49, %s3664_s9 }
 0x211   : > { %848 = vrot.lane.b32.xlu0 %v3056_v50, %s3664_s9  ;;  %789 = vrot.lane.b32.xlu1 %v3059_v49, %s3665_s10 }
 0x215   : > { %783 = vrot.lane.b32.xlu0 %v3056_v50, %s3665_s10  ;;  %850 = vrot.lane.b32.xlu1 %v3057_v51, %s3664_s9 }
 0x219   : > { %785 = vrot.lane.b32.xlu1 %v3057_v51, %s3665_s10 }
 0x24b   : > { %v869_v53 = vpop.permute.xlu0 %868 }
 0x24c   : > { %906 = vst.msk [vmem:[#allocation2 + $0x68] sm:$0xf] %vm831_vm2, %v869_v53  ;;  %v3424_v53 = vld [vmem:[%s3781_s19] ss:$8 sps:$4 sm:$0xff]  }
 0x24f   : > { %v804_v54 = vpop.permute.xlu0 %803  ;;  %v871_v55 = vpop.permute.xlu1 %870 }
 0x250   : > { %842 = vst.msk [vmem:[#allocation2 + $0x28] sm:$0xf] %vm831_vm2, %v804_v54  ;;  %907 = vst.msk [vmem:[#allocation2 + $0x6c] sm:$0xf] %vm831_vm2, %v871_v55  ;;  %v3427_v54 = vld [vmem:[%s3781_s19 + $0x14] ss:$8 sps:$4 sm:$0xff]  }
 0x251   : > { %v3429_v55 = vld [vmem:[%s3781_s19 + $0x10] ss:$8 sps:$4 sm:$0xff]  }
 0x253   : > { %v865_v56 = vpop.permute.xlu0 %864  ;;  %v806_v57 = vpop.permute.xlu1 %805 }
 0x254   : > { %904 = vst.msk [vmem:[#allocation2 + $0x60] sm:$0xf] %vm831_vm2, %v865_v56  ;;  %843 = vst.msk [vmem:[#allocation2 + $0x2c] sm:$0xf] %vm831_vm2, %v806_v57  ;;  %v3430_v56 = vld [vmem:[%s3781_s19 + $0x24] ss:$8 sps:$4 sm:$0xff]  }
 0x255   : > { %v3432_v57 = vld [vmem:[%s3781_s19 + $0x20] ss:$8 sps:$4 sm:$0xff]  }
 0x257   : > { %v800_v58 = vpop.permute.xlu0 %799  ;;  %v867_v59 = vpop.permute.xlu1 %866  ;;  %v3412_v18 = vld [vmem:[#allocation2 + $0x68] sm:$0xff]  }
 0x258   : > { %840 = vst.msk [vmem:[#allocation2 + $0x20] sm:$0xf] %vm831_vm2, %v800_v58  ;;  %905 = vst.msk [vmem:[#allocation2 + $0x64] sm:$0xf] %vm831_vm2, %v867_v59  ;;  %v3433_v58 = vld [vmem:[%s3781_s19 + $0x34] ss:$8 sps:$4 sm:$0xff]  }
 0x259   : > { %v3435_v59 = vld [vmem:[%s3781_s19 + $0x30] ss:$8 sps:$4 sm:$0xff]  }
 0x25b   : > { %v802_v60 = vpop.permute.xlu1 %801  ;;  %v877_v61 = vpop.permute.xlu0 %876  ;;  %v3413_v32 = vld [vmem:[#allocation2 + $0x28] sm:$0xff]  }
 0x25c   : > { %841 = vst.msk [vmem:[#allocation2 + $0x24] sm:$0xf] %vm831_vm2, %v802_v60  ;;  %910 = vst.msk [vmem:[#allocation2 + $0x78] sm:$0xf] %vm831_vm2, %v877_v61  ;;  %v3436_v60 = vld [vmem:[%s3781_s19 + $0x44] ss:$8 sps:$4 sm:$0xff]  }
 0x25d   : > { %v3438_v61 = vld [vmem:[%s3781_s19 + $0x40] ss:$8 sps:$4 sm:$0xff]  }
 0x25f   : > { %v812_v62 = vpop.permute.xlu1 %811  ;;  %v873_v63 = vpop.permute.xlu0 %872  ;;  %v3414_v33 = vld [vmem:[#allocation2 + $0x60] sm:$0xff]  }
 0x260   : > { %846 = vst.msk [vmem:[#allocation2 + $0x38] sm:$0xf] %vm831_vm2, %v812_v62  ;;  %908 = vst.msk [vmem:[#allocation2 + $0x70] sm:$0xf] %vm831_vm2, %v873_v63  ;;  %v3439_v62 = vld [vmem:[%s3781_s19 + $0x54] ss:$8 sps:$4 sm:$0xff]  }
 0x261   : > { %v3441_v63 = vld [vmem:[%s3781_s19 + $0x50] ss:$8 sps:$4 sm:$0xff]  }
 0x263   : > { %v863_v0 = vpop.permute.xlu1 %862  ;;  %v808_v1 = vpop.permute.xlu0 %807  ;;  %v3415_v39 = vld [vmem:[#allocation2 + $0x20] sm:$0xff]  }
 0x264   : > { %903 = vst.msk [vmem:[#allocation2 + $0x5c] sm:$0xf] %vm831_vm2, %v863_v0  ;;  %844 = vst.msk [vmem:[#allocation2 + $0x30] sm:$0xf] %vm831_vm2, %v808_v1  ;;  %v3442_v0 = vld [vmem:[%s3781_s19 + $0x64] ss:$8 sps:$4 sm:$0xff]  }
 0x265   : > { %v3444_v1 = vld [vmem:[%s3781_s19 + $0x60] ss:$8 sps:$4 sm:$0xff]  }
 0x267   : > { %v798_v2 = vpop.permute.xlu1 %797  ;;  %v879_v3 = vpop.permute.xlu0 %878 }
 0x268   : > { %839 = vst.msk [vmem:[#allocation2 + $0x1c] sm:$0xf] %vm831_vm2, %v798_v2  ;;  %911 = vst.msk [vmem:[#allocation2 + $0x7c] sm:$0xf] %vm831_vm2, %v879_v3  ;;  %v3445_v2 = vld [vmem:[%s3781_s19 + $0x74] ss:$8 sps:$4 sm:$0xff]  }
 0x269   : > { %v3447_v3 = vld [vmem:[%s3781_s19 + $0x70] ss:$8 sps:$4 sm:$0xff]  }
 0x26b   : > { %v814_v4 = vpop.permute.xlu1 %813  ;;  %v861_v5 = vpop.permute.xlu0 %860 }
 0x26c   : > { %847 = vst.msk [vmem:[#allocation2 + $0x3c] sm:$0xf] %vm831_vm2, %v814_v4  ;;  %902 = vst.msk [vmem:[#allocation2 + $0x58] sm:$0xf] %vm831_vm2, %v861_v5  ;;  %v3448_v4 = vld [vmem:[%s4644_s3 + $0x18] sm:$0xff]   ;;  %v3449_v5 = vld [vmem:[%s4644_s3 + $0x10] sm:$0xff]  }
 0x26d   : > { %3310 = vmatprep.subr.bf16.mxu1 %v3448_v4 }
 0x26e   : > { %3311 = vmatpush3.bf16.msra.mxu1 %v3448_v4 }
 0x26f   : > { %v796_v6 = vpop.permute.xlu0 %795  ;;  %v875_v7 = vpop.permute.xlu1 %874  ;;  %v3408_v8 = vld [vmem:[#allocation2 + $0x78] sm:$0xff]   ;;  %3312 = vmatprep.subr.bf16.mxu1 %v3449_v5 }
 0x270   : > { %838 = vst.msk [vmem:[#allocation2 + $0x18] sm:$0xf] %vm831_vm2, %v796_v6  ;;  %909 = vst.msk [vmem:[#allocation2 + $0x74] sm:$0xf] %vm831_vm2, %v875_v7  ;;  %3123 = vmatprep.subr.bf16.mxu0 %v3408_v8 }
 0x272   : > { %3313 = vmatpush3.bf16.msra.mxu1 %v3449_v5 }
 0x273   : > { %v857_v9 = vpop.permute.xlu0 %856  ;;  %v810_v10 = vpop.permute.xlu1 %809  ;;  %v3409_v11 = vld [vmem:[#allocation2 + $0x38] sm:$0xff]  }
 0x274   : > { %900 = vst.msk [vmem:[#allocation2 + $0x50] sm:$0xf] %vm831_vm2, %v857_v9  ;;  %845 = vst.msk [vmem:[#allocation2 + $0x34] sm:$0xf] %vm831_vm2, %v810_v10  ;;  %3124 = vmatpush3.bf16.msra.mxu0 %v3409_v11  ;;  %v3416_v40 = vld [vmem:[#allocation2 + $0x58] sm:$0xff]  }
 0x275   : > { %v3994_v9 = vld [vmem:[%s4646_s5 + $0x1] ss:$0 sm:$0xff] }
 0x276   : > { %v719_v11 = vadd.f32 %v3994_v9, %v3843_v21  ;;  %v722_v21 = vadd.f32 %v3845_v22, %v3994_v9 }
 0x277   : > { %v792_v12 = vpop.permute.xlu0 %791  ;;  %v859_v13 = vpop.permute.xlu1 %858  ;;  %v3410_v14 = vld [vmem:[#allocation2 + $0x70] sm:$0xff]   ;;  %v3417_v45 = vld [vmem:[#allocation2 + $0x18] sm:$0xff]  }
 0x278   : > { %836 = vst.msk [vmem:[#allocation2 + $0x10] sm:$0xf] %vm831_vm2, %v792_v12  ;;  %901 = vst.msk [vmem:[#allocation2 + $0x54] sm:$0xf] %vm831_vm2, %v859_v13  ;;  %3125 = vmatprep.subr.bf16.mxu0 %v3410_v14  ;;  %v720_v13 = vadd.f32 %v3994_v9, %v3847_v23 }
 0x27b   : > { %v853_v15 = vpop.permute.xlu0 %852  ;;  %v794_v16 = vpop.permute.xlu1 %793  ;;  %v3411_v17 = vld [vmem:[#allocation2 + $0x30] sm:$0xff]  }
 0x27c   : > { %898 = vst.msk [vmem:[#allocation2 + $0x48] sm:$0xf] %vm831_vm2, %v853_v15  ;;  %837 = vst.msk [vmem:[#allocation2 + $0x14] sm:$0xf] %vm831_vm2, %v794_v16  ;;  %3126 = vmatpush3.bf16.msra.mxu0 %v3411_v17 }
 0x27d   : > { %3127 = vmatprep.subr.bf16.mxu0 %v3412_v18 }
 0x27f   : > { %v788_v19 = vpop.permute.xlu0 %787  ;;  %v855_v29 = vpop.permute.xlu1 %854  ;;  %v3418_v46 = vld [vmem:[#allocation2 + $0x50] sm:$0xff]  }
 0x280   : > { %834 = vst.msk [vmem:[#allocation2 + $0x8] sm:$0xf] %vm831_vm2, %v788_v19  ;;  %899 = vst.msk [vmem:[#allocation2 + $0x4c] sm:$0xf] %vm831_vm2, %v855_v29  ;;  %3128 = vmatpush3.bf16.msra.mxu0 %v3413_v32 }
 0x281   : > { %3129 = vmatprep.subr.bf16.mxu0 %v3414_v33 }
 0x283   : > { %v849_v35 = vpop.permute.xlu0 %848  ;;  %v790_v37 = vpop.permute.xlu1 %789  ;;  %v3419_v48 = vld [vmem:[#allocation2 + $0x10] sm:$0xff]  }
 0x284   : > { %896 = vst.msk [vmem:[#allocation2 + $0x40] sm:$0xf] %vm831_vm2, %v849_v35  ;;  %835 = vst.msk [vmem:[#allocation2 + $0xc] sm:$0xf] %vm831_vm2, %v790_v37  ;;  %3130 = vmatpush3.bf16.msra.mxu0 %v3415_v39  ;;  %v721_v35 = vadd.f32 %v3841_v20, %v3994_v9 }
 0x285   : > { %3131 = vmatprep.subr.bf16.mxu0 %v3416_v40 }
 0x287   : > { %v784_v42 = vpop.permute.xlu0 %783  ;;  %v851_v43 = vpop.permute.xlu1 %850  ;;  %v3420_v49 = vld [vmem:[#allocation2 + $0x48] sm:$0xff]  }
 0x288   : > { %832 = vst.msk [vmem:[#allocation2] sm:$0xf] %vm831_vm2, %v784_v42  ;;  %897 = vst.msk [vmem:[#allocation2 + $0x44] sm:$0xf] %vm831_vm2, %v851_v43  ;;  %3132 = vmatpush3.bf16.msra.mxu0 %v3417_v45 }
 0x289   : > { %3133 = vmatprep.subr.bf16.mxu0 %v3418_v46 }
 0x28b   : > { %v786_v47 = vpop.permute.xlu1 %785  ;;  %v3421_v50 = vld [vmem:[#allocation2 + $0x8] sm:$0xff]  }
 0x28c   : > { %833 = vst.msk [vmem:[#allocation2 + $0x4] sm:$0xf] %vm831_vm2, %v786_v47  ;;  %3134 = vmatpush3.bf16.msra.mxu0 %v3419_v48 }
 0x28d   : > { %3135 = vmatprep.subr.bf16.mxu0 %v3420_v49 }
 0x28f   : > { %v3422_v51 = vld [vmem:[#allocation2 + $0x40] sm:$0xff]  }
 0x290   : > { %3136 = vmatpush3.bf16.msra.mxu0 %v3421_v50  ;;  %v723_v50 = vadd.f32 %v3994_v9, %v3851_v25 }
 0x291   : > { %3137 = vmatprep.subr.bf16.mxu0 %v3422_v51 }
 0x293   : > { %v3423_v52 = vld [vmem:[#allocation2] sm:$0xff]  }
 0x294   : > { %3138 = vmatpush3.bf16.msra.mxu0 %v3423_v52  ;;  %v724_v52 = vadd.f32 %v3994_v9, %v3855_v27 }
 0x297   : > { %1169 = vmatmul.mubr.bf16.vlgmr.msra.gmra.mxu0 %v3424_v53 }
 0x298   : > { %1176 = vmatprep.mubr.bf16.mxu0 %v3427_v54 }
 0x29f   : > { %1177 = vmatmul.mubr.bf16.gmra.mxu0 %v3429_v55 }
 0x2a0   : > { %1184 = vmatprep.mubr.bf16.mxu0 %v3430_v56 }
 0x2a7   : > { %1185 = vmatmul.mubr.bf16.gmra.mxu0 %v3432_v57 }
 0x2a8   : > { %1192 = vmatprep.mubr.bf16.mxu0 %v3433_v58 }
 0x2af   : > { %1193 = vmatmul.mubr.bf16.gmra.mxu0 %v3435_v59 }
 0x2b0   : > { %1200 = vmatprep.mubr.bf16.mxu0 %v3436_v60 }
 0x2b7   : > { %1201 = vmatmul.mubr.bf16.gmra.mxu0 %v3438_v61  ;;  %v725_v61 = vadd.f32 %v3849_v24, %v3994_v9 }
 0x2b8   : > { %1208 = vmatprep.mubr.bf16.mxu0 %v3439_v62 }
 0x2bf   : > { %1209 = vmatmul.mubr.bf16.gmra.mxu0 %v3441_v63  ;;  %v726_v63 = vadd.f32 %v3853_v26, %v3994_v9 }
 0x2c0   : > { %1216 = vmatprep.mubr.bf16.mxu0 %v3442_v0 }
 0x2c7   : > { %1217 = vmatmul.mubr.bf16.gmra.mxu0 %v3444_v1 }
 0x2c8   : > { %1224 = vmatprep.mubr.bf16.mxu0 %v3445_v2 }
 0x2cf   : > { %1225 = vmatmul.mubr.bf16.gmra.mxu0 %v3447_v3 }
 0x357   : > { %v3139_v6 = vpop.f32.mrf.mxu0 }
 0x359   : > { %v3140_v7 = vpop.f32.mrf.mxu0 }
 0x35a   : > { %v3141_v8 = vadd.f32 %v3140_v7, %v3139_v6 }
 0x35b   : > { %v3142_v10 = vpop.f32.mrf.mxu0 }
 0x35c   : > { %v1233_v14 = vadd.f32 %v3141_v8, %v719_v11  ;;  %v727_v8 = vadd.f32 %v3994_v9, %v3861_v30  ;;  %v728_v11 = vadd.f32 %v3994_v9, %v3872_v34 }
 0x35d   : > { %v3143_v12 = vpop.f32.mrf.mxu0 }
 0x35e   : > { %v3144_v15 = vadd.f32 %v3143_v12, %v3142_v10  ;;  %v1249_v19 = vmax.f32 %v1233_v14, 0.0 }
 0x35f   : > { %v3145_v16 = vpop.f32.mrf.mxu0 }
 0x360   : > { %v1234_v17 = vadd.f32 %v3144_v15, %v720_v13 }
 0x361   : > { %v3146_v18 = vpop.f32.mrf.mxu0 }
 0x362   : > { %v1250_v29 = vmax.f32 %v1234_v17, 0.0  ;;  %v3147_v32 = vadd.f32 %v3146_v18, %v3145_v16 }
 0x363   : > { %v3148_v33 = vpop.f32.mrf.mxu0 }
 0x364   : > { %v1265_v37 = vpack.c.bf16 %v1250_v29, %v1249_v19  ;;  %v1235_v40 = vadd.f32 %v3147_v32, %v721_v35  ;;  %v729_v29 = vadd.f32 %v3857_v28, %v3994_v9 }
 0x365   : > { %v3149_v39 = vpop.f32.mrf.mxu0 }
 0x366   : > { %v3150_v42 = vadd.f32 %v3149_v39, %v3148_v33  ;;  %3314 = vmatprep.mubr.msk.bf16.mxu1 %vm592_vm1, %v1265_v37  ;;  %v1251_v46 = vmax.f32 %v1235_v40, 0.0  ;;  %v730_v33 = vadd.f32 %v3864_v31, %v3994_v9 }
 0x367   : > { %v3151_v23 = vpop.f32.mrf.mxu0 }
 0x368   : > { %v1236_v43 = vadd.f32 %v3150_v42, %v722_v21 }
 0x369   : > { %v3152_v45 = vpop.f32.mrf.mxu0 }
 0x36a   : > { %v1252_v47 = vmax.f32 %v1236_v43, 0.0  ;;  %v3153_v48 = vadd.f32 %v3152_v45, %v3151_v23  ;;  %v731_v45 = vadd.f32 %v3994_v9, %v3886_v38 }
 0x36b   : > { %v3154_v49 = vpop.f32.mrf.mxu0 }
 0x36c   : > { %v1266_v20 = vpack.c.bf16 %v1252_v47, %v1251_v46  ;;  %v1237_v22 = vadd.f32 %v3153_v48, %v723_v50  ;;  %v732_v47 = vadd.f32 %v3994_v9, %v3904_v44 }
 0x36d   : > { %v3155_v51 = vpop.f32.mrf.mxu0 }
 0x36e   : > { %v3156_v53 = vadd.f32 %v3155_v51, %v3154_v49  ;;  %3315 = vmatmul.mubr.msk.bf16.vlgmr.msra.gmra.mxu1 %vm592_vm1, %v1266_v20  ;;  %v1253_v57 = vmax.f32 %v1237_v22, 0.0 }
 0x36f   : > { %v3157_v54 = vpop.f32.mrf.mxu0 }
 0x370   : > { %v1238_v55 = vadd.f32 %v3156_v53, %v724_v52 }
 0x371   : > { %v3158_v56 = vpop.f32.mrf.mxu0 }
 0x372   : > { %v1254_v58 = vmax.f32 %v1238_v55, 0.0  ;;  %v3159_v59 = vadd.f32 %v3158_v56, %v3157_v54  ;;  %v733_v54 = vadd.f32 %v3880_v36, %v3994_v9  ;;  %v734_v56 = vadd.f32 %v3894_v41, %v3994_v9 }
 0x373   : > { %v3160_v60 = vpop.f32.mrf.mxu0 }
 0x374   : > { %v1267_v25 = vpack.c.bf16 %v1254_v58, %v1253_v57  ;;  %v1239_v27 = vadd.f32 %v3159_v59, %v725_v61 }
 0x375   : > { %v3161_v62 = vpop.f32.mrf.mxu0 }
 0x376   : > { %v3162_v0 = vadd.f32 %v3161_v62, %v3160_v60  ;;  %3318 = vmatprep.mubr.msk.bf16.mxu1 %vm592_vm1, %v1267_v25  ;;  %v1255_v4 = vmax.f32 %v1239_v27, 0.0 }
 0x377   : > { %v3163_v1 = vpop.f32.mrf.mxu0 }
 0x378   : > { %v1240_v2 = vadd.f32 %v3162_v0, %v726_v63 }
 0x379   : > { %v3164_v3 = vpop.f32.mrf.mxu0 }
 0x37a   : > { %v1256_v5 = vmax.f32 %v1240_v2, 0.0  ;;  %v3165_v6 = vadd.f32 %v3164_v3, %v3163_v1 }
 0x37b   : > { %v3166_v7 = vpop.f32.mrf.mxu0 }
 0x37c   : > { %v1268_v24 = vpack.c.bf16 %v1256_v5, %v1255_v4  ;;  %v1241_v26 = vadd.f32 %v3165_v6, %v727_v8 }
 0x37d   : > { %v3167_v10 = vpop.f32.mrf.mxu0 }
 0x37e   : > { %v3168_v12 = vadd.f32 %v3167_v10, %v3166_v7  ;;  %3319 = vmatmul.mubr.msk.bf16.gmra.mxu1 %vm592_vm1, %v1268_v24  ;;  %v1257_v16 = vmax.f32 %v1241_v26, 0.0 }
 0x37f   : > { %v3169_v13 = vpop.f32.mrf.mxu0 }
 0x380   : > { %v1242_v14 = vadd.f32 %v3168_v12, %v728_v11 }
 0x381   : > { %v3170_v15 = vpop.f32.mrf.mxu0 }
 0x382   : > { %v1258_v17 = vmax.f32 %v1242_v14, 0.0  ;;  %v3171_v18 = vadd.f32 %v3170_v15, %v3169_v13 }
 0x383   : > { %v3172_v19 = vpop.f32.mrf.mxu0 }
 0x384   : > { %v1269_v30 = vpack.c.bf16 %v1258_v17, %v1257_v16  ;;  %v1243_v34 = vadd.f32 %v3171_v18, %v729_v29 }
 0x385   : > { %v3173_v32 = vpop.f32.mrf.mxu0 }
 0x386   : > { %v3174_v35 = vadd.f32 %v3173_v32, %v3172_v19  ;;  %3322 = vmatprep.mubr.msk.bf16.mxu1 %vm592_vm1, %v1269_v30  ;;  %v1259_v40 = vmax.f32 %v1243_v34, 0.0  ;;  %v3468_v34 = vld [vmem:[%s3781_s19 + $0x84] ss:$8 sps:$4 sm:$0xff]  }
 0x387   : > { %v3175_v37 = vpop.f32.mrf.mxu0 }
 0x388   : > { %v1244_v39 = vadd.f32 %v3174_v35, %v730_v33 }
 0x389   : > { %v3176_v21 = vpop.f32.mrf.mxu0 }
 0x38a   : > { %v1260_v42 = vmax.f32 %v1244_v39, 0.0  ;;  %v3177_v23 = vadd.f32 %v3176_v21, %v3175_v37 }
 0x38b   : > { %v3178_v43 = vpop.f32.mrf.mxu0 }
 0x38c   : > { %v1270_v28 = vpack.c.bf16 %v1260_v42, %v1259_v40  ;;  %v1245_v31 = vadd.f32 %v3177_v23, %v731_v45  ;;  %v3490_v40 = vld [vmem:[%s4645_s4 + $0x10] ss:$0 sps:$4 sm:$0xff]   ;;  %v3581_v42 = vld [vmem:[%s3795_s15] sm:$0xf]  ;;  %v3582_v23 = vld [vmem:[%s3795_s15 + $0x4] sm:$0xf] }
 0x38d   : > { %v3179_v46 = vpop.f32.mrf.mxu0  ;;  %3352 = vmatprep.subr.msk.bf16.mxu0 %vm2147_vm3, %v3490_v40 }
 0x38e   : > { %v3180_v48 = vadd.f32 %v3179_v46, %v3178_v43  ;;  %3323 = vmatmul.mubr.msk.bf16.gmra.mxu1 %vm592_vm1, %v1270_v28  ;;  %v1261_v51 = vmax.f32 %v1245_v31, 0.0  ;;  %v2149_v43 = vsel %vm2147_vm3, %v3490_v40, 0  ;;  %v3583_v28 = vld [vmem:[%s3795_s15 + $0x8] sm:$0xf]  ;;  %v3584_v46 = vld [vmem:[%s3795_s15 + $0xc] sm:$0xf] }
 0x38f   : > { %v3181_v49 = vpop.f32.mrf.mxu0  ;;  %3331 = vmatpush3.bf16.msra.mxu0 %v2149_v43 }
 0x390   : > { %v1246_v50 = vadd.f32 %v3180_v48, %v732_v47  ;;  %v3585_v48 = vld [vmem:[%s3795_s15 + $0x10] sm:$0xf] }
 0x391   : > { %v3182_v20 = vpop.f32.mrf.mxu0 }
 0x392   : > { %v1262_v52 = vmax.f32 %v1246_v50, 0.0  ;;  %v3183_v22 = vadd.f32 %v3182_v20, %v3181_v49  ;;  %v3586_v49 = vld [vmem:[%s3795_s15 + $0x14] sm:$0xf] }
 0x393   : > { %v3184_v53 = vpop.f32.mrf.mxu0 }
 0x394   : > { %v1271_v38 = vpack.c.bf16 %v1262_v52, %v1261_v51  ;;  %v1247_v44 = vadd.f32 %v3183_v22, %v733_v54  ;;  %v3587_v51 = vld [vmem:[%s3795_s15 + $0x18] sm:$0xf]  ;;  %v3588_v52 = vld [vmem:[%s3795_s15 + $0x1c] sm:$0xf]  ;;  %v3589_v54 = vld [vmem:[%s3795_s15 + $0x20] sm:$0xf] }
 0x395   : > { %v3185_v55 = vpop.f32.mrf.mxu0 }
 0x396   : > { %v3186_v57 = vadd.f32 %v3185_v55, %v3184_v53  ;;  %3326 = vmatprep.mubr.msk.bf16.mxu1 %vm592_vm1, %v1271_v38  ;;  %v1263_v59 = vmax.f32 %v1247_v44, 0.0  ;;  %v3590_v38 = vld [vmem:[%s3795_s15 + $0x24] sm:$0xf]  ;;  %v3591_v44 = vld [vmem:[%s3795_s15 + $0x28] sm:$0xf] }
 0x398   : > { %v1248_v58 = vadd.f32 %v3186_v57, %v734_v56  ;;  %v3592_v57 = vld [vmem:[%s3795_s15 + $0x2c] sm:$0xf] }
 0x39a   : > { %v1264_v60 = vmax.f32 %v1248_v58, 0.0 }
 0x39c   : > { %v1272_v61 = vpack.c.bf16 %v1264_v60, %v1263_v59  ;;  %v3593_v60 = vld [vmem:[%s3795_s15 + $0x30] sm:$0xf] }
 0x39e   : > { %3327 = vmatmul.mubr.msk.bf16.gmra.mxu1 %vm592_vm1, %v1272_v61  ;;  %v3594_v61 = vld [vmem:[%s3795_s15 + $0x34] sm:$0xf] }
 0x39f   : > { %1865 = vmatprep.mubr.bf16.mxu1 %v3468_v34 }
 0x42e   : > { %v4036_v25 = vpop.f32.mrf.mxu1 }
 0x42f   : > { %v3074_v29 = vpack.c.bf16 %v4036_v25, %v4036_v25 }
 0x430   : > { %v4038_v62 = vpop.f32.mrf.mxu1 }
 0x431   : > { %v3072_v32 = vpack.c.bf16 %v4038_v62, %v4038_v62 }
 0x432   : > { %v4040_v36 = vpop.f32.mrf.mxu1 }
 0x433   : > { %v3075_v30 = vpack.c.bf16 %v4040_v36, %v4040_v36 }
 0x434   : > { %v4042_v63 = vpop.f32.mrf.mxu1 }
 0x435   : > { %v3073_v33 = vpack.c.bf16 %v4042_v63, %v4042_v63 }
 0x43e   : > { %v4044_v27 = vpop.f32.mrf.mxu1 }
 0x43f   : > { %v3078_v41 = vpack.c.bf16 %v4044_v27, %v4044_v27 }
 0x440   : > { %v4048_v9 = vpop.f32.mrf.mxu1 }
 0x441   : > { %1556 = vrot.lane.b32.xlu0 %v3078_v41, %s3664_s9  ;;  %v3076_v18 = vpack.c.bf16 %v4048_v9, %v4048_v9 }
 0x442   : > { %v4051_v0 = vpop.f32.mrf.mxu1 }
 0x443   : > { %v3079_v1 = vpack.c.bf16 %v4051_v0, %v4051_v0 }
 0x444   : > { %v4058_v2 = vpop.f32.mrf.mxu1 }
 0x445   : > { %1492 = vrot.lane.b32.xlu0 %v3078_v41, %s3665_s10  ;;  %1558 = vrot.lane.b32.xlu1 %v3079_v1, %s3664_s9  ;;  %v3077_v19 = vpack.c.bf16 %v4058_v2, %v4058_v2 }
 0x449   : > { %1494 = vrot.lane.b32.xlu1 %v3079_v1, %s3665_s10 }
 0x44e   : > { %v4060_v3 = vpop.f32.mrf.mxu1 }
 0x44f   : > { %v3082_v4 = vpack.c.bf16 %v4060_v3, %v4060_v3 }
 0x450   : > { %v4064_v5 = vpop.f32.mrf.mxu1 }
 0x451   : > { %1564 = vrot.lane.b32.xlu0 %v3082_v4, %s3664_s9  ;;  %v3080_v8 = vpack.c.bf16 %v4064_v5, %v4064_v5 }
 0x452   : > { %v4067_v6 = vpop.f32.mrf.mxu1 }
 0x453   : > { %v3083_v7 = vpack.c.bf16 %v4067_v6, %v4067_v6 }
 0x454   : > { %v4075_v24 = vpop.f32.mrf.mxu1 }
 0x455   : > { %1500 = vrot.lane.b32.xlu0 %v3082_v4, %s3665_s10  ;;  %1566 = vrot.lane.b32.xlu1 %v3083_v7, %s3664_s9  ;;  %v3081_v10 = vpack.c.bf16 %v4075_v24, %v4075_v24  ;;  %v3595_v4 = vld [vmem:[%s3795_s15 + $0x38] sm:$0xf] }
 0x459   : > { %1560 = vrot.lane.b32.xlu0 %v3080_v8, %s3664_s9  ;;  %1502 = vrot.lane.b32.xlu1 %v3083_v7, %s3665_s10  ;;  %v3596_v7 = vld [vmem:[%s3795_s15 + $0x3c] sm:$0xf]  ;;  %s289_s15 = scalar_lea.vmem %s4647_s6, %s2855_s14 }
 0x45d   : > { %1496 = vrot.lane.b32.xlu0 %v3080_v8, %s3665_s10  ;;  %1562 = vrot.lane.b32.xlu1 %v3081_v10, %s3664_s9 }
 0x45e   : > { %v4083_v11 = vpop.f32.mrf.mxu1 }
 0x45f   : > { %v3086_v26 = vpack.c.bf16 %v4083_v11, %v4083_v11 }
 0x460   : > { %v4087_v12 = vpop.f32.mrf.mxu1 }
 0x461   : > { %1498 = vrot.lane.b32.xlu1 %v3081_v10, %s3665_s10  ;;  %1572 = vrot.lane.b32.xlu0 %v3086_v26, %s3664_s9  ;;  %v3084_v15 = vpack.c.bf16 %v4087_v12, %v4087_v12 }
 0x462   : > { %v4091_v13 = vpop.f32.mrf.mxu1 }
 0x463   : > { %v3087_v14 = vpack.c.bf16 %v4091_v13, %v4091_v13 }
 0x464   : > { %v4099_v16 = vpop.f32.mrf.mxu1 }
 0x465   : > { %1508 = vrot.lane.b32.xlu0 %v3086_v26, %s3665_s10  ;;  %1574 = vrot.lane.b32.xlu1 %v3087_v14, %s3664_s9  ;;  %v3085_v17 = vpack.c.bf16 %v4099_v16, %v4099_v16 }
 0x469   : > { %1568 = vrot.lane.b32.xlu0 %v3084_v15, %s3664_s9  ;;  %1510 = vrot.lane.b32.xlu1 %v3087_v14, %s3665_s10 }
 0x46d   : > { %1504 = vrot.lane.b32.xlu0 %v3084_v15, %s3665_s10  ;;  %1570 = vrot.lane.b32.xlu1 %v3085_v17, %s3664_s9 }
 0x471   : > { %1552 = vrot.lane.b32.xlu0 %v3076_v18, %s3664_s9  ;;  %1506 = vrot.lane.b32.xlu1 %v3085_v17, %s3665_s10 }
 0x475   : > { %1488 = vrot.lane.b32.xlu0 %v3076_v18, %s3665_s10  ;;  %1554 = vrot.lane.b32.xlu1 %v3077_v19, %s3664_s9 }
 0x479   : > { %1548 = vrot.lane.b32.xlu0 %v3074_v29, %s3664_s9  ;;  %1490 = vrot.lane.b32.xlu1 %v3077_v19, %s3665_s10 }
 0x47d   : > { %1484 = vrot.lane.b32.xlu0 %v3074_v29, %s3665_s10  ;;  %1550 = vrot.lane.b32.xlu1 %v3075_v30, %s3664_s9 }
 0x481   : > { %1544 = vrot.lane.b32.xlu0 %v3072_v32, %s3664_s9  ;;  %1486 = vrot.lane.b32.xlu1 %v3075_v30, %s3665_s10 }
 0x485   : > { %1480 = vrot.lane.b32.xlu0 %v3072_v32, %s3665_s10  ;;  %1546 = vrot.lane.b32.xlu1 %v3073_v33, %s3664_s9 }
 0x489   : > { %1482 = vrot.lane.b32.xlu1 %v3073_v33, %s3665_s10  ;;  %329 = vrot.lane.b32.xlu0 %v3581_v42, %s3666_s20 }
 0x48d   : > { %331 = vrot.lane.b32.xlu1 %v3582_v23, %s3666_s20  ;;  %333 = vrot.lane.b32.xlu0 %v3583_v28, %s3666_s20 }
 0x491   : > { %335 = vrot.lane.b32.xlu1 %v3584_v46, %s3666_s20  ;;  %337 = vrot.lane.b32.xlu0 %v3585_v48, %s3666_s20 }
 0x495   : > { %339 = vrot.lane.b32.xlu1 %v3586_v49, %s3666_s20  ;;  %341 = vrot.lane.b32.xlu0 %v3587_v51, %s3666_s20 }
 0x499   : > { %343 = vrot.lane.b32.xlu1 %v3588_v52, %s3666_s20  ;;  %345 = vrot.lane.b32.xlu0 %v3589_v54, %s3666_s20  ;;  %v3466_v52 = vld [vmem:[%s3781_s19 + $0x80] ss:$8 sps:$4 sm:$0xff]   ;;  %v3472_v54 = vld [vmem:[%s3781_s19 + $0xa4] ss:$8 sps:$4 sm:$0xff]  }
 0x49d   : > { %347 = vrot.lane.b32.xlu1 %v3590_v38, %s3666_s20  ;;  %349 = vrot.lane.b32.xlu0 %v3591_v44, %s3666_s20  ;;  %v3474_v38 = vld [vmem:[%s3781_s19 + $0xa0] ss:$8 sps:$4 sm:$0xff]   ;;  %v3478_v44 = vld [vmem:[%s3781_s19 + $0xc4] ss:$8 sps:$4 sm:$0xff]  }
 0x4a1   : > { %351 = vrot.lane.b32.xlu1 %v3592_v57, %s3666_s20  ;;  %353 = vrot.lane.b32.xlu0 %v3593_v60, %s3666_s20  ;;  %v3480_v57 = vld [vmem:[%s3781_s19 + $0xc0] ss:$8 sps:$4 sm:$0xff]   ;;  %v3484_v60 = vld [vmem:[%s3781_s19 + $0xe4] ss:$8 sps:$4 sm:$0xff]  }
 0x4a5   : > { %355 = vrot.lane.b32.xlu1 %v3594_v61, %s3666_s20  ;;  %357 = vrot.lane.b32.xlu0 %v3595_v4, %s3666_s20  ;;  %v3486_v61 = vld [vmem:[%s3781_s19 + $0xe0] ss:$8 sps:$4 sm:$0xff]  }
 0x4a9   : > { %359 = vrot.lane.b32.xlu1 %v3596_v7, %s3666_s20 }
 0x4b3   : > { %v1557_v35 = vpop.permute.xlu0 %1556 }
 0x4b4   : > { %1598 = vst.msk [vmem:[#allocation2 + $0x58] sm:$0xf] %vm831_vm2, %v1557_v35 }
 0x4b7   : > { %v1493_v37 = vpop.permute.xlu0 %1492  ;;  %v1559_v39 = vpop.permute.xlu1 %1558 }
 0x4b8   : > { %1534 = vst.msk [vmem:[#allocation2 + $0x18] sm:$0xf] %vm831_vm2, %v1493_v37  ;;  %1599 = vst.msk [vmem:[#allocation2 + $0x5c] sm:$0xf] %vm831_vm2, %v1559_v39 }
 0x4bb   : > { %v1495_v21 = vpop.permute.xlu1 %1494 }
 0x4bc   : > { %1535 = vst.msk [vmem:[#allocation2 + $0x1c] sm:$0xf] %vm831_vm2, %v1495_v21 }
 0x4bf   : > { %v3458_v43 = vld [vmem:[#allocation2 + $0x58] sm:$0xff]  }
 0x4c3   : > { %v1565_v45 = vpop.permute.xlu0 %1564  ;;  %v3459_v46 = vld [vmem:[#allocation2 + $0x18] sm:$0xff]  }
 0x4c4   : > { %1602 = vst.msk [vmem:[#allocation2 + $0x68] sm:$0xf] %vm831_vm2, %v1565_v45 }
 0x4c7   : > { %v1501_v47 = vpop.permute.xlu0 %1500  ;;  %v1567_v31 = vpop.permute.xlu1 %1566 }
 0x4c8   : > { %1538 = vst.msk [vmem:[#allocation2 + $0x28] sm:$0xf] %vm831_vm2, %v1501_v47  ;;  %1603 = vst.msk [vmem:[#allocation2 + $0x6c] sm:$0xf] %vm831_vm2, %v1567_v31 }
 0x4cb   : > { %v1561_v50 = vpop.permute.xlu0 %1560  ;;  %v1503_v20 = vpop.permute.xlu1 %1502 }
 0x4cc   : > { %1600 = vst.msk [vmem:[#allocation2 + $0x60] sm:$0xf] %vm831_vm2, %v1561_v50  ;;  %1539 = vst.msk [vmem:[#allocation2 + $0x2c] sm:$0xf] %vm831_vm2, %v1503_v20 }
 0x4cf   : > { %v1497_v22 = vpop.permute.xlu0 %1496  ;;  %v1563_v53 = vpop.permute.xlu1 %1562  ;;  %v3454_v34 = vld [vmem:[#allocation2 + $0x68] sm:$0xff]  }
 0x4d0   : > { %1536 = vst.msk [vmem:[#allocation2 + $0x20] sm:$0xf] %vm831_vm2, %v1497_v22  ;;  %1601 = vst.msk [vmem:[#allocation2 + $0x64] sm:$0xf] %vm831_vm2, %v1563_v53  ;;  %v3469_v22 = vld [vmem:[%s3781_s19 + $0x94] ss:$8 sps:$4 sm:$0xff]  }
 0x4d1   : > { %v3471_v53 = vld [vmem:[%s3781_s19 + $0x90] ss:$8 sps:$4 sm:$0xff]  }
 0x4d3   : > { %v1499_v55 = vpop.permute.xlu1 %1498  ;;  %v1573_v56 = vpop.permute.xlu0 %1572  ;;  %v3455_v39 = vld [vmem:[#allocation2 + $0x28] sm:$0xff]  }
 0x4d4   : > { %1537 = vst.msk [vmem:[#allocation2 + $0x24] sm:$0xf] %vm831_vm2, %v1499_v55  ;;  %1606 = vst.msk [vmem:[#allocation2 + $0x78] sm:$0xf] %vm831_vm2, %v1573_v56  ;;  %v3475_v55 = vld [vmem:[%s3781_s19 + $0xb4] ss:$8 sps:$4 sm:$0xff]  }
 0x4d5   : > { %v3477_v56 = vld [vmem:[%s3781_s19 + $0xb0] ss:$8 sps:$4 sm:$0xff]  }
 0x4d7   : > { %v1509_v58 = vpop.permute.xlu0 %1508  ;;  %v1575_v59 = vpop.permute.xlu1 %1574  ;;  %v3456_v21 = vld [vmem:[#allocation2 + $0x60] sm:$0xff]  }
 0x4d8   : > { %1542 = vst.msk [vmem:[#allocation2 + $0x38] sm:$0xf] %vm831_vm2, %v1509_v58  ;;  %1607 = vst.msk [vmem:[#allocation2 + $0x7c] sm:$0xf] %vm831_vm2, %v1575_v59  ;;  %v3481_v58 = vld [vmem:[%s3781_s19 + $0xd4] ss:$8 sps:$4 sm:$0xff]  }
 0x4d9   : > { %v3483_v59 = vld [vmem:[%s3781_s19 + $0xd0] ss:$8 sps:$4 sm:$0xff]  }
 0x4db   : > { %v1569_v41 = vpop.permute.xlu0 %1568  ;;  %v1511_v1 = vpop.permute.xlu1 %1510  ;;  %v3457_v23 = vld [vmem:[#allocation2 + $0x20] sm:$0xff]  }
 0x4dc   : > { %1604 = vst.msk [vmem:[#allocation2 + $0x70] sm:$0xf] %vm831_vm2, %v1569_v41  ;;  %1543 = vst.msk [vmem:[#allocation2 + $0x3c] sm:$0xf] %vm831_vm2, %v1511_v1  ;;  %v3487_v41 = vld [vmem:[%s3781_s19 + $0xf4] ss:$8 sps:$4 sm:$0xff]  }
 0x4dd   : > { %v3489_v1 = vld [vmem:[%s3781_s19 + $0xf0] ss:$8 sps:$4 sm:$0xff]  }
 0x4df   : > { %v1505_v8 = vpop.permute.xlu0 %1504  ;;  %v1571_v10 = vpop.permute.xlu1 %1570  ;;  %v3450_v26 = vld [vmem:[#allocation2 + $0x78] sm:$0xff]  }
 0x4e0   : > { %1540 = vst.msk [vmem:[#allocation2 + $0x30] sm:$0xf] %vm831_vm2, %v1505_v8  ;;  %1605 = vst.msk [vmem:[#allocation2 + $0x74] sm:$0xf] %vm831_vm2, %v1571_v10  ;;  %3197 = vmatprep.subr.bf16.mxu1 %v3450_v26  ;;  %v3491_v10 = vld [vmem:[%s4645_s4 + $0x8] sm:$0xff]  }
 0x4e1   : > { %3332 = vmatprep.subr.bf16.mxu0 %v3491_v10 }
 0x4e2   : > { %3333 = vmatpush3.bf16.msra.mxu0 %v3491_v10 }
 0x4e3   : > { %v1553_v14 = vpop.permute.xlu0 %1552  ;;  %v1507_v15 = vpop.permute.xlu1 %1506  ;;  %v3451_v17 = vld [vmem:[#allocation2 + $0x38] sm:$0xff]  }
 0x4e4   : > { %1596 = vst.msk [vmem:[#allocation2 + $0x50] sm:$0xf] %vm831_vm2, %v1553_v14  ;;  %1541 = vst.msk [vmem:[#allocation2 + $0x34] sm:$0xf] %vm831_vm2, %v1507_v15  ;;  %3198 = vmatpush3.bf16.msra.mxu1 %v3451_v17  ;;  %v3493_v15 = vld [vmem:[%s4645_s4] sm:$0xff]  }
 0x4e5   : > { %3334 = vmatprep.subr.bf16.mxu0 %v3493_v15 }
 0x4e6   : > { %3335 = vmatpush3.bf16.msra.mxu0 %v3493_v15 }
 0x4e7   : > { %v1489_v18 = vpop.permute.xlu0 %1488  ;;  %v1555_v19 = vpop.permute.xlu1 %1554  ;;  %v3452_v29 = vld [vmem:[#allocation2 + $0x70] sm:$0xff]  }
 0x4e8   : > { %1532 = vst.msk [vmem:[#allocation2 + $0x10] sm:$0xf] %vm831_vm2, %v1489_v18  ;;  %1597 = vst.msk [vmem:[#allocation2 + $0x54] sm:$0xf] %vm831_vm2, %v1555_v19  ;;  %3199 = vmatprep.subr.bf16.mxu1 %v3452_v29 }
 0x4eb   : > { %v1549_v30 = vpop.permute.xlu0 %1548  ;;  %v1491_v32 = vpop.permute.xlu1 %1490  ;;  %v3453_v33 = vld [vmem:[#allocation2 + $0x30] sm:$0xff]  }
 0x4ec   : > { %1594 = vst.msk [vmem:[#allocation2 + $0x48] sm:$0xf] %vm831_vm2, %v1549_v30  ;;  %1533 = vst.msk [vmem:[#allocation2 + $0x14] sm:$0xf] %vm831_vm2, %v1491_v32  ;;  %3200 = vmatpush3.bf16.msra.mxu1 %v3453_v33 }
 0x4ed   : > { %3201 = vmatprep.subr.bf16.mxu1 %v3454_v34 }
 0x4ef   : > { %v1485_v35 = vpop.permute.xlu0 %1484  ;;  %v1551_v37 = vpop.permute.xlu1 %1550  ;;  %v3460_v47 = vld [vmem:[#allocation2 + $0x50] sm:$0xff]  }
 0x4f0   : > { %1530 = vst.msk [vmem:[#allocation2 + $0x8] sm:$0xf] %vm831_vm2, %v1485_v35  ;;  %1595 = vst.msk [vmem:[#allocation2 + $0x4c] sm:$0xf] %vm831_vm2, %v1551_v37  ;;  %3202 = vmatpush3.bf16.msra.mxu1 %v3455_v39 }
 0x4f1   : > { %3203 = vmatprep.subr.bf16.mxu1 %v3456_v21 }
 0x4f3   : > { %v1545_v40 = vpop.permute.xlu0 %1544  ;;  %v1487_v42 = vpop.permute.xlu1 %1486  ;;  %v3461_v48 = vld [vmem:[#allocation2 + $0x10] sm:$0xff]  }
 0x4f4   : > { %1592 = vst.msk [vmem:[#allocation2 + $0x40] sm:$0xf] %vm831_vm2, %v1545_v40  ;;  %1531 = vst.msk [vmem:[#allocation2 + $0xc] sm:$0xf] %vm831_vm2, %v1487_v42  ;;  %3204 = vmatpush3.bf16.msra.mxu1 %v3457_v23  ;;  %v4240_v40 = vld [vmem:[%s4646_s5 + $0x2] ss:$0 sm:$0xff] }
 0x4f5   : > { %3205 = vmatprep.subr.bf16.mxu1 %v3458_v43  ;;  %v1416_v23 = vadd.f32 %v4240_v40, %v4038_v62  ;;  %v1421_v10 = vadd.f32 %v4240_v40, %v4058_v2 }
 0x4f7   : > { %v1481_v45 = vpop.permute.xlu0 %1480  ;;  %v1547_v28 = vpop.permute.xlu1 %1546  ;;  %v3462_v49 = vld [vmem:[#allocation2 + $0x48] sm:$0xff]  }
 0x4f8   : > { %1528 = vst.msk [vmem:[#allocation2] sm:$0xf] %vm831_vm2, %v1481_v45  ;;  %1593 = vst.msk [vmem:[#allocation2 + $0x44] sm:$0xf] %vm831_vm2, %v1547_v28  ;;  %3206 = vmatpush3.bf16.msra.mxu1 %v3459_v46 }
 0x4f9   : > { %3207 = vmatprep.subr.bf16.mxu1 %v3460_v47  ;;  %v1417_v47 = vadd.f32 %v4240_v40, %v4042_v63 }
 0x4fb   : > { %v1483_v31 = vpop.permute.xlu1 %1482  ;;  %v3463_v50 = vld [vmem:[#allocation2 + $0x8] sm:$0xff]   ;;  %v330_v4 = vpop.permute.xlu0 %329 }
 0x4fc   : > { %1529 = vst.msk [vmem:[#allocation2 + $0x4] sm:$0xf] %vm831_vm2, %v1483_v31  ;;  %3208 = vmatpush3.bf16.msra.mxu1 %v3461_v48 }
 0x4fd   : > { %3209 = vmatprep.subr.bf16.mxu1 %v3462_v49  ;;  %378 = vst.msk [vmem:[#allocation3] sm:$0xf] %vm377_vm4, %v330_v4 }
 0x4ff   : > { %v3464_v20 = vld [vmem:[#allocation2 + $0x40] sm:$0xff]   ;;  %v332_v7 = vpop.permute.xlu1 %331  ;;  %v334_v8 = vpop.permute.xlu0 %333 }
 0x500   : > { %3210 = vmatpush3.bf16.msra.mxu1 %v3463_v50  ;;  %379 = vst.msk [vmem:[#allocation3 + $0x4] sm:$0xf] %vm377_vm4, %v332_v7  ;;  %380 = vst.msk [vmem:[#allocation3 + $0x8] sm:$0xf] %vm377_vm4, %v334_v8 }
 0x501   : > { %3211 = vmatprep.subr.bf16.mxu1 %v3464_v20 }
 0x503   : > { %v3465_v51 = vld [vmem:[#allocation2] sm:$0xff]   ;;  %v336_v26 = vpop.permute.xlu1 %335  ;;  %v338_v14 = vpop.permute.xlu0 %337 }
 0x504   : > { %3212 = vmatpush3.bf16.msra.mxu1 %v3465_v51  ;;  %381 = vst.msk [vmem:[#allocation3 + $0xc] sm:$0xf] %vm377_vm4, %v336_v26  ;;  %382 = vst.msk [vmem:[#allocation3 + $0x10] sm:$0xf] %vm377_vm4, %v338_v14 }
 0x507   : > { %1866 = vmatmul.mubr.bf16.vlgmr.msra.gmra.mxu1 %v3466_v52  ;;  %v340_v17 = vpop.permute.xlu1 %339  ;;  %v342_v18 = vpop.permute.xlu0 %341  ;;  %v1418_v52 = vadd.f32 %v4036_v25, %v4240_v40 }
 0x508   : > { %1873 = vmatprep.mubr.bf16.mxu1 %v3469_v22  ;;  %383 = vst.msk [vmem:[#allocation3 + $0x14] sm:$0xf] %vm377_vm4, %v340_v17  ;;  %384 = vst.msk [vmem:[#allocation3 + $0x18] sm:$0xf] %vm377_vm4, %v342_v18 }
 0x50b   : > { %v344_v19 = vpop.permute.xlu1 %343  ;;  %v346_v29 = vpop.permute.xlu0 %345 }
 0x50c   : > { %385 = vst.msk [vmem:[#allocation3 + $0x1c] sm:$0xf] %vm377_vm4, %v344_v19  ;;  %386 = vst.msk [vmem:[#allocation3 + $0x20] sm:$0xf] %vm377_vm4, %v346_v29  ;;  %v1422_v19 = vadd.f32 %v4044_v27, %v4240_v40 }
 0x50f   : > { %1874 = vmatmul.mubr.bf16.gmra.mxu1 %v3471_v53  ;;  %v348_v30 = vpop.permute.xlu1 %347  ;;  %v350_v32 = vpop.permute.xlu0 %349 }
 0x510   : > { %1881 = vmatprep.mubr.bf16.mxu1 %v3472_v54  ;;  %387 = vst.msk [vmem:[#allocation3 + $0x24] sm:$0xf] %vm377_vm4, %v348_v30  ;;  %388 = vst.msk [vmem:[#allocation3 + $0x28] sm:$0xf] %vm377_vm4, %v350_v32 }
 0x513   : > { %v352_v33 = vpop.permute.xlu1 %351  ;;  %v354_v34 = vpop.permute.xlu0 %353 }
 0x514   : > { %389 = vst.msk [vmem:[#allocation3 + $0x2c] sm:$0xf] %vm377_vm4, %v352_v33  ;;  %390 = vst.msk [vmem:[#allocation3 + $0x30] sm:$0xf] %vm377_vm4, %v354_v34 }
 0x517   : > { %1882 = vmatmul.mubr.bf16.gmra.mxu1 %v3474_v38  ;;  %v356_v35 = vpop.permute.xlu1 %355  ;;  %v358_v37 = vpop.permute.xlu0 %357 }
 0x518   : > { %1889 = vmatprep.mubr.bf16.mxu1 %v3475_v55  ;;  %391 = vst.msk [vmem:[#allocation3 + $0x34] sm:$0xf] %vm377_vm4, %v356_v35  ;;  %392 = vst.msk [vmem:[#allocation3 + $0x38] sm:$0xf] %vm377_vm4, %v358_v37  ;;  %v1419_v55 = vadd.f32 %v4040_v36, %v4240_v40  ;;  %v1423_v37 = vadd.f32 %v4051_v0, %v4240_v40 }
 0x51b   : > { %v360_v39 = vpop.permute.xlu1 %359 }
 0x51c   : > { %393 = vst.msk [vmem:[#allocation3 + $0x3c] sm:$0xf] %vm377_vm4, %v360_v39 }
 0x51f   : > { %1890 = vmatmul.mubr.bf16.gmra.mxu1 %v3477_v56 }
 0x520   : > { %1897 = vmatprep.mubr.bf16.mxu1 %v3478_v44 }
 0x527   : > { %1898 = vmatmul.mubr.bf16.gmra.mxu1 %v3480_v57 }
 0x528   : > { %1905 = vmatprep.mubr.bf16.mxu1 %v3481_v58 }
 0x52f   : > { %1906 = vmatmul.mubr.bf16.gmra.mxu1 %v3483_v59 }
 0x530   : > { %1913 = vmatprep.mubr.bf16.mxu1 %v3484_v60  ;;  %v1420_v60 = vadd.f32 %v4240_v40, %v4048_v9 }
 0x537   : > { %1914 = vmatmul.mubr.bf16.gmra.mxu1 %v3486_v61 }
 0x538   : > { %1921 = vmatprep.mubr.bf16.mxu1 %v3487_v41 }
 0x53f   : > { %1922 = vmatmul.mubr.bf16.gmra.mxu1 %v3489_v1 }
 0x5c7   : > { %v3213_v21 = vpop.f32.mrf.mxu1 }
 0x5c9   : > { %v3214_v42 = vpop.f32.mrf.mxu1 }
 0x5ca   : > { %v3215_v43 = vadd.f32 %v3214_v42, %v3213_v21 }
 0x5cb   : > { %v3216_v45 = vpop.f32.mrf.mxu1 }
 0x5cc   : > { %v1930_v28 = vadd.f32 %v3215_v43, %v1416_v23 }
 0x5cd   : > { %v3217_v46 = vpop.f32.mrf.mxu1 }
 0x5ce   : > { %v4246_v31 = vmax.f32 %v1930_v28, 0.0  ;;  %v3218_v48 = vadd.f32 %v3217_v46, %v3216_v45  ;;  %v1424_v45 = vadd.f32 %v4240_v40, %v4064_v5 }
 0x5cf   : > { %v3219_v49 = vpop.f32.mrf.mxu1 }
 0x5d0   : > { %v3088_v50 = vpack.c.bf16 %v4246_v31, %v4246_v31  ;;  %v1931_v20 = vadd.f32 %v3218_v48, %v1417_v47 }
 0x5d1   : > { %v3220_v51 = vpop.f32.mrf.mxu1 }
 0x5d2   : > { %v4252_v62 = vmax.f32 %v1931_v20, 0.0  ;;  %2026 = vst.msk [vmem:[#allocation3] sm:$0xf] %vm831_vm2, %v3088_v50  ;;  %v3221_v22 = vadd.f32 %v3220_v51, %v3219_v49  ;;  %v1425_v20 = vadd.f32 %v4240_v40, %v4075_v24 }
 0x5d3   : > { %v3222_v53 = vpop.f32.mrf.mxu1 }
 0x5d4   : > { %v3089_v63 = vpack.c.bf16 %v4252_v62, %v4252_v62  ;;  %v1932_v54 = vadd.f32 %v3221_v22, %v1418_v52 }
 0x5d5   : > { %v3223_v38 = vpop.f32.mrf.mxu1 }
 0x5d6   : > { %v4259_v56 = vmax.f32 %v1932_v54, 0.0  ;;  %2027 = vst.msk [vmem:[#allocation3 + $0x4] sm:$0xf] %vm831_vm2, %v3089_v63  ;;  %v3224_v44 = vadd.f32 %v3223_v38, %v3222_v53  ;;  %v1426_v54 = vadd.f32 %v4060_v3, %v4240_v40 }
 0x5d7   : > { %v3225_v25 = vpop.f32.mrf.mxu1 }
 0x5d8   : > { %v3090_v57 = vpack.c.bf16 %v4259_v56, %v4259_v56  ;;  %v1933_v58 = vadd.f32 %v3224_v44, %v1419_v55 }
 0x5d9   : > { %v3226_v59 = vpop.f32.mrf.mxu1 }
 0x5da   : > { %v4266_v61 = vmax.f32 %v1933_v58, 0.0  ;;  %2028 = vst.msk [vmem:[#allocation3 + $0x8] sm:$0xf] %vm831_vm2, %v3090_v57  ;;  %v3227_v41 = vadd.f32 %v3226_v59, %v3225_v25  ;;  %v1427_v59 = vadd.f32 %v4067_v6, %v4240_v40 }
 0x5db   : > { %v3228_v36 = vpop.f32.mrf.mxu1 }
 0x5dc   : > { %v3091_v1 = vpack.c.bf16 %v4266_v61, %v4266_v61  ;;  %v1934_v4 = vadd.f32 %v3227_v41, %v1420_v60 }
 0x5dd   : > { %v3229_v7 = vpop.f32.mrf.mxu1  ;;  %v3492_v8 = vld [vmem:[#allocation3] sm:$0xff]  }
 0x5de   : > { %v4273_v26 = vmax.f32 %v1934_v4, 0.0  ;;  %2029 = vst.msk [vmem:[#allocation3 + $0xc] sm:$0xf] %vm831_vm2, %v3091_v1  ;;  %v3230_v9 = vadd.f32 %v3229_v7, %v3228_v36  ;;  %3336 = vmatprep.mubr.msk.bf16.mxu0 %vm2122_vm5, %v3492_v8  ;;  %v1428_v7 = vadd.f32 %v4240_v40, %v4087_v12 }
 0x5df   : > { %v3231_v14 = vpop.f32.mrf.mxu1 }
 0x5e0   : > { %v3092_v15 = vpack.c.bf16 %v4273_v26, %v4273_v26  ;;  %v1935_v17 = vadd.f32 %v3230_v9, %v1421_v10 }
 0x5e1   : > { %v3232_v18 = vpop.f32.mrf.mxu1 }
 0x5e2   : > { %v4281_v29 = vmax.f32 %v1935_v17, 0.0  ;;  %2030 = vst.msk [vmem:[#allocation3 + $0x10] sm:$0xf] %vm831_vm2, %v3092_v15  ;;  %v3233_v2 = vadd.f32 %v3232_v18, %v3231_v14  ;;  %v1429_v18 = vadd.f32 %v4240_v40, %v4099_v16 }
 0x5e3   : > { %v3234_v30 = vpop.f32.mrf.mxu1 }
 0x5e4   : > { %v3093_v32 = vpack.c.bf16 %v4281_v29, %v4281_v29  ;;  %v1936_v33 = vadd.f32 %v3233_v2, %v1422_v19 }
 0x5e5   : > { %v3235_v34 = vpop.f32.mrf.mxu1  ;;  %v3494_v35 = vld [vmem:[#allocation3 + $0x8] sm:$0xff]  }
 0x5e6   : > { %v4288_v39 = vmax.f32 %v1936_v33, 0.0  ;;  %2031 = vst.msk [vmem:[#allocation3 + $0x14] sm:$0xf] %vm831_vm2, %v3093_v32  ;;  %v3236_v27 = vadd.f32 %v3235_v34, %v3234_v30  ;;  %3337 = vmatmul.mubr.msk.bf16.vlgmr.msra.gmra.mxu0 %vm2122_vm5, %v3494_v35  ;;  %v1430_v34 = vadd.f32 %v4083_v11, %v4240_v40 }
 0x5e7   : > { %v3237_v21 = vpop.f32.mrf.mxu1 }
 0x5e8   : > { %v3094_v42 = vpack.c.bf16 %v4288_v39, %v4288_v39  ;;  %v1937_v23 = vadd.f32 %v3236_v27, %v1423_v37 }
 0x5e9   : > { %v3238_v43 = vpop.f32.mrf.mxu1 }
 0x5ea   : > { %v4296_v28 = vmax.f32 %v1937_v23, 0.0  ;;  %2032 = vst.msk [vmem:[#allocation3 + $0x18] sm:$0xf] %vm831_vm2, %v3094_v42  ;;  %v3239_v0 = vadd.f32 %v3238_v43, %v3237_v21  ;;  %v1431_v43 = vadd.f32 %v4091_v13, %v4240_v40  ;;  %v4365_v40 = vld [vmem:[%s4646_s5 + $0x3] ss:$0 sm:$0xff] }
 0x5eb   : > { %v3240_v46 = vpop.f32.mrf.mxu1 }
 0x5ec   : > { %v3095_v47 = vpack.c.bf16 %v4296_v28, %v4296_v28  ;;  %v1938_v48 = vadd.f32 %v3239_v0, %v1424_v45 }
 0x5ed   : > { %v3241_v49 = vpop.f32.mrf.mxu1  ;;  %v3495_v50 = vld [vmem:[#allocation3 + $0x10] sm:$0xff]  }
 0x5ee   : > { %v4303_v51 = vmax.f32 %v1938_v48, 0.0  ;;  %2033 = vst.msk [vmem:[#allocation3 + $0x1c] sm:$0xf] %vm831_vm2, %v3095_v47  ;;  %v3242_v5 = vadd.f32 %v3241_v49, %v3240_v46  ;;  %3340 = vmatprep.mubr.msk.bf16.mxu0 %vm2122_vm5, %v3495_v50 }
 0x5ef   : > { %v3243_v52 = vpop.f32.mrf.mxu1 }
 0x5f0   : > { %v3096_v22 = vpack.c.bf16 %v4303_v51, %v4303_v51  ;;  %v1939_v53 = vadd.f32 %v3242_v5, %v1425_v20 }
 0x5f1   : > { %v3244_v63 = vpop.f32.mrf.mxu1 }
 0x5f2   : > { %v4311_v38 = vmax.f32 %v1939_v53, 0.0  ;;  %2034 = vst.msk [vmem:[#allocation3 + $0x20] sm:$0xf] %vm831_vm2, %v3096_v22  ;;  %v3245_v24 = vadd.f32 %v3244_v63, %v3243_v52 }
 0x5f3   : > { %v3246_v55 = vpop.f32.mrf.mxu1 }
 0x5f4   : > { %v3097_v44 = vpack.c.bf16 %v4311_v38, %v4311_v38  ;;  %v1940_v25 = vadd.f32 %v3245_v24, %v1426_v54  ;;  %v4374_v24 = vld [vmem:[%s4646_s5 + $0x4] ss:$0 sm:$0xff] }
 0x5f5   : > { %v3247_v57 = vpop.f32.mrf.mxu1  ;;  %v3496_v58 = vld [vmem:[#allocation3 + $0x18] sm:$0xff]  }
 0x5f6   : > { %v4318_v60 = vmax.f32 %v1940_v25, 0.0  ;;  %2035 = vst.msk [vmem:[#allocation3 + $0x24] sm:$0xf] %vm831_vm2, %v3097_v44  ;;  %v3248_v3 = vadd.f32 %v3247_v57, %v3246_v55  ;;  %3341 = vmatmul.mubr.msk.bf16.gmra.mxu0 %vm2122_vm5, %v3496_v58 }
 0x5f7   : > { %v3249_v41 = vpop.f32.mrf.mxu1 }
 0x5f8   : > { %v3098_v36 = vpack.c.bf16 %v4318_v60, %v4318_v60  ;;  %v1941_v1 = vadd.f32 %v3248_v3, %v1427_v59 }
 0x5f9   : > { %v3250_v4 = vpop.f32.mrf.mxu1 }
 0x5fa   : > { %v4326_v8 = vmax.f32 %v1941_v1, 0.0  ;;  %2036 = vst.msk [vmem:[#allocation3 + $0x28] sm:$0xf] %vm831_vm2, %v3098_v36  ;;  %v3251_v6 = vadd.f32 %v3250_v4, %v3249_v41 }
 0x5fb   : > { %v3252_v10 = vpop.f32.mrf.mxu1 }
 0x5fc   : > { %v3099_v9 = vpack.c.bf16 %v4326_v8, %v4326_v8  ;;  %v1942_v14 = vadd.f32 %v3251_v6, %v1428_v7 }
 0x5fd   : > { %v3253_v15 = vpop.f32.mrf.mxu1  ;;  %v3497_v17 = vld [vmem:[#allocation3 + $0x20] sm:$0xff]  }
 0x5fe   : > { %v4333_v19 = vmax.f32 %v1942_v14, 0.0  ;;  %2037 = vst.msk [vmem:[#allocation3 + $0x2c] sm:$0xf] %vm831_vm2, %v3099_v9  ;;  %v3254_v12 = vadd.f32 %v3253_v15, %v3252_v10  ;;  %3344 = vmatprep.mubr.msk.bf16.mxu0 %vm2122_vm5, %v3497_v17 }
 0x5ff   : > { %v3255_v2 = vpop.f32.mrf.mxu1 }
 0x600   : > { %v3100_v30 = vpack.c.bf16 %v4333_v19, %v4333_v19  ;;  %v1943_v32 = vadd.f32 %v3254_v12, %v1429_v18 }
 0x601   : > { %v3256_v33 = vpop.f32.mrf.mxu1 }
 0x602   : > { %v4341_v35 = vmax.f32 %v1943_v32, 0.0  ;;  %2038 = vst.msk [vmem:[#allocation3 + $0x30] sm:$0xf] %vm831_vm2, %v3100_v30  ;;  %v3257_v16 = vadd.f32 %v3256_v33, %v3255_v2 }
 0x603   : > { %v3258_v37 = vpop.f32.mrf.mxu1 }
 0x604   : > { %v3101_v27 = vpack.c.bf16 %v4341_v35, %v4341_v35  ;;  %v1944_v21 = vadd.f32 %v3257_v16, %v1430_v34 }
 0x605   : > { %v3259_v42 = vpop.f32.mrf.mxu1  ;;  %v3498_v23 = vld [vmem:[#allocation3 + $0x28] sm:$0xff]  }
 0x606   : > { %v4348_v45 = vmax.f32 %v1944_v21, 0.0  ;;  %2039 = vst.msk [vmem:[#allocation3 + $0x34] sm:$0xf] %vm831_vm2, %v3101_v27  ;;  %v3260_v11 = vadd.f32 %v3259_v42, %v3258_v37  ;;  %3345 = vmatmul.mubr.msk.bf16.gmra.mxu0 %vm2122_vm5, %v3498_v23 }
 0x608   : > { %v3102_v0 = vpack.c.bf16 %v4348_v45, %v4348_v45  ;;  %v1945_v46 = vadd.f32 %v3260_v11, %v1431_v43 }
 0x60a   : > { %v4354_v47 = vmax.f32 %v1945_v46, 0.0  ;;  %2040 = vst.msk [vmem:[#allocation3 + $0x38] sm:$0xf] %vm831_vm2, %v3102_v0 }
 0x60c   : > { %v3103_v48 = vpack.c.bf16 %v4354_v47, %v4354_v47 }
 0x60d   : > { %v3499_v49 = vld [vmem:[#allocation3 + $0x30] sm:$0xff]  }
 0x60e   : > { %2041 = vst.msk [vmem:[#allocation3 + $0x3c] sm:$0xf] %vm831_vm2, %v3103_v48  ;;  %3348 = vmatprep.mubr.msk.bf16.mxu0 %vm2122_vm5, %v3499_v49 }
 0x615   : > { %v3500_v13 = vld [vmem:[#allocation3 + $0x38] sm:$0xff]  }
 0x616   : > { %3349 = vmatmul.mubr.msk.bf16.gmra.mxu0 %vm2122_vm5, %v3500_v13 }
 0x6a6   : > { %v3338_v50 = vpop.f32.mrf.mxu0 }
 0x6a7   : > { %v2194_v20 = vadd.f32 %v3338_v50, %v4365_v40 }
 0x6a8   : > { %v2185_v5 = vpop.f32.mrf.mxu0 }
 0x6a9   : > { %3501 = vtanh.f32 %v2194_v20  ;;  %v2186_v52 = vadd.f32 %v4365_v40, %v2185_v5 }
 0x6aa   : > { %v3339_v22 = vpop.f32.mrf.mxu0 }
 0x6ab   : > { %3503 = vtanh.f32 %v2186_v52  ;;  %v2197_v53 = vadd.f32 %v3339_v22, %v4365_v40 }
 0x6ac   : > { %v2188_v63 = vpop.f32.mrf.mxu0 }
 0x6ad   : > { %3505 = vtanh.f32 %v2197_v53  ;;  %v2189_v54 = vadd.f32 %v4365_v40, %v2188_v63 }
 0x6af   : > { %3507 = vtanh.f32 %v2189_v54 }
 0x6b6   : > { %v3502_v55 = vpop.eup %3501  ;;  %v3342_v44 = vpop.f32.mrf.mxu0 }
 0x6b7   : > { %v2210_v25 = vadd.f32 %v3342_v44, %v4365_v40  ;;  %v2270_v57 = vmul.f32 %v3502_v55, %v4374_v24 }
 0x6b8   : > { %v3504_v58 = vpop.eup %3503  ;;  %v2201_v59 = vpop.f32.mrf.mxu0 }
 0x6b9   : > { %3509 = vtanh.f32 %v2210_v25  ;;  %v2202_v3 = vadd.f32 %v4365_v40, %v2201_v59  ;;  %v2290_v41 = vsel %vm592_vm1, %v2270_v57, 0.0  ;;  %v2268_v36 = vmul.f32 %v3504_v58, %v4374_v24 }
 0x6ba   : > { %v3506_v1 = vpop.eup %3505  ;;  %2291 = vadd.xlane.f32.xlu0 %v2290_v41  ;;  %v3343_v4 = vpop.f32.mrf.mxu0 }
 0x6bb   : > { %3511 = vtanh.f32 %v2202_v3  ;;  %v2213_v7 = vadd.f32 %v3343_v4, %v4365_v40  ;;  %v2284_v6 = vsel %vm592_vm1, %v2268_v36, 0.0  ;;  %v2271_v10 = vmul.f32 %v3506_v1, %v4374_v24 }
 0x6bc   : > { %v3508_v9 = vpop.eup %3507  ;;  %2285 = vadd.xlane.f32.xlu1 %v2284_v6  ;;  %v2204_v14 = vpop.f32.mrf.mxu0 }
 0x6bd   : > { %3513 = vtanh.f32 %v2213_v7  ;;  %v2205_v15 = vadd.f32 %v4365_v40, %v2204_v14  ;;  %v2269_v17 = vmul.f32 %v3508_v9, %v4374_v24  ;;  %v2293_v12 = vsel %vm592_vm1, %v2271_v10, 0.0 }
 0x6bf   : > { %3515 = vtanh.f32 %v2205_v15  ;;  %v2287_v18 = vsel %vm592_vm1, %v2269_v17, 0.0 }
 0x6c0   : > { %2288 = vadd.xlane.f32.xlu0 %v2287_v18  ;;  %2294 = vadd.xlane.f32.xlu1 %v2293_v12 }
 0x6c6   : > { %v3510_v2 = vpop.eup %3509  ;;  %v3346_v30 = vpop.f32.mrf.mxu0 }
 0x6c7   : > { %v2226_v32 = vadd.f32 %v3346_v30, %v4365_v40  ;;  %v2274_v33 = vmul.f32 %v3510_v2, %v4374_v24  ;;  %v3050_v30 = vld [vmem:[%s4646_s5 + $0x5] ss:$0 sm:$0xff] }
 0x6c8   : > { %v3512_v34 = vpop.eup %3511  ;;  %v2217_v16 = vpop.f32.mrf.mxu0 }
 0x6c9   : > { %3517 = vtanh.f32 %v2226_v32  ;;  %v2218_v37 = vadd.f32 %v4365_v40, %v2217_v16  ;;  %v2302_v27 = vsel %vm592_vm1, %v2274_v33, 0.0  ;;  %v2272_v21 = vmul.f32 %v3512_v34, %v4374_v24 }
 0x6ca   : > { %v3514_v42 = vpop.eup %3513  ;;  %2303 = vadd.xlane.f32.xlu1 %v2302_v27  ;;  %v3347_v23 = vpop.f32.mrf.mxu0  ;;  %v2358_v16 = vmul.f32 %v3050_v30, %v4259_v56  ;;  %v2356_v56 = vmul.f32 %v3050_v30, %v4246_v31  ;;  %v2364_v31 = vmul.f32 %v3050_v30, %v4303_v51  ;;  %v2368_v51 = vmul.f32 %v3050_v30, %v4333_v19 }
 0x6cb   : > { %3519 = vtanh.f32 %v2218_v37  ;;  %v2229_v43 = vadd.f32 %v3347_v23, %v4365_v40  ;;  %v2296_v11 = vsel %vm592_vm1, %v2272_v21, 0.0  ;;  %v2275_v0 = vmul.f32 %v3514_v42, %v4374_v24 }
 0x6cc   : > { %v3516_v46 = vpop.eup %3515  ;;  %2297 = vadd.xlane.f32.xlu0 %v2296_v11  ;;  %v2220_v48 = vpop.f32.mrf.mxu0  ;;  %v2378_v27 = vsel %vm592_vm1, %v2358_v16, 0.0  ;;  %v2359_v21 = vmul.f32 %v3050_v30, %v4266_v61  ;;  %v2360_v42 = vmul.f32 %v3050_v30, %v4273_v26  ;;  %v2357_v61 = vmul.f32 %v3050_v30, %v4252_v62 }
 0x6cd   : > { %3521 = vtanh.f32 %v2229_v43  ;;  %v2221_v49 = vadd.f32 %v4365_v40, %v2220_v48  ;;  %v2305_v13 = vsel %vm592_vm1, %v2275_v0, 0.0  ;;  %v2273_v50 = vmul.f32 %v3516_v46, %v4374_v24 }
 0x6ce   : > { %v2381_v23 = vsel %vm592_vm1, %v2359_v21, 0.0  ;;  %v2384_v43 = vsel %vm592_vm1, %v2360_v42, 0.0  ;;  %v2372_v0 = vsel %vm592_vm1, %v2356_v56, 0.0  ;;  %v2362_v26 = vmul.f32 %v3050_v30, %v4288_v39 }
 0x6cf   : > { %3523 = vtanh.f32 %v2221_v49  ;;  %v2299_v20 = vsel %vm592_vm1, %v2273_v50, 0.0  ;;  %v2375_v46 = vsel %vm592_vm1, %v2357_v61, 0.0  ;;  %v2365_v62 = vmul.f32 %v3050_v30, %v4311_v38 }
 0x6d0   : > { %2306 = vadd.xlane.f32.xlu0 %v2305_v13  ;;  %v2390_v48 = vsel %vm592_vm1, %v2362_v26, 0.0  ;;  %v2396_v13 = vsel %vm592_vm1, %v2364_v31, 0.0  ;;  %v2366_v39 = vmul.f32 %v3050_v30, %v4318_v60  ;;  %v2369_v38 = vmul.f32 %v3050_v30, %v4341_v35 }
 0x6d1   : > { %v2399_v50 = vsel %vm592_vm1, %v2365_v62, 0.0  ;;  %v2370_v60 = vmul.f32 %v3050_v30, %v4348_v45 }
 0x6d4   : > { %2300 = vadd.xlane.f32.xlu0 %v2299_v20  ;;  %v2402_v20 = vsel %vm592_vm1, %v2366_v39, 0.0 }
 0x6d6   : > { %v3518_v5 = vpop.eup %3517  ;;  %v3350_v52 = vpop.f32.mrf.mxu0 }
 0x6d7   : > { %v2242_v22 = vadd.f32 %v3350_v52, %v4365_v40  ;;  %v2278_v53 = vmul.f32 %v3518_v5, %v4374_v24  ;;  %v2408_v52 = vsel %vm592_vm1, %v2368_v51, 0.0 }
 0x6d8   : > { %v3520_v63 = vpop.eup %3519  ;;  %v2233_v54 = vpop.f32.mrf.mxu0 }
 0x6d9   : > { %v2234_v55 = vadd.f32 %v4365_v40, %v2233_v54  ;;  %v2314_v44 = vsel %vm592_vm1, %v2278_v53, 0.0  ;;  %v2276_v25 = vmul.f32 %v3520_v63, %v4374_v24  ;;  %3525 = vtanh.f32 %v2242_v22  ;;  %v4458_v63 = vld [vmem:[%s4646_s5 + $0x6] ss:$0 sm:$0xff] }
 0x6da   : > { %v3522_v57 = vpop.eup %3521  ;;  %2315 = vadd.xlane.f32.xlu1 %v2314_v44  ;;  %v3351_v58 = vpop.f32.mrf.mxu0  ;;  %v2411_v22 = vsel %vm592_vm1, %v2369_v38, 0.0  ;;  %v2414_v53 = vsel %vm592_vm1, %v2370_v60, 0.0 }
 0x6db   : > { %3527 = vtanh.f32 %v2234_v55  ;;  %v2245_v59 = vadd.f32 %v3351_v58, %v4365_v40  ;;  %v2279_v3 = vmul.f32 %v3522_v57, %v4374_v24  ;;  %v2308_v7 = vsel %vm592_vm1, %v2276_v25, 0.0 }
 0x6dc   : > { %v3524_v41 = vpop.eup %3523  ;;  %v2236_v36 = vpop.f32.mrf.mxu0 }
 0x6dd   : > { %v2237_v1 = vadd.f32 %v4365_v40, %v2236_v36  ;;  %v2317_v4 = vsel %vm592_vm1, %v2279_v3, 0.0  ;;  %v2277_v6 = vmul.f32 %v3524_v41, %v4374_v24  ;;  %3529 = vtanh.f32 %v2245_v59 }
 0x6de   : > { %2318 = vadd.xlane.f32.xlu0 %v2317_v4  ;;  %2309 = vadd.xlane.f32.xlu1 %v2308_v7 }
 0x6df   : > { %3531 = vtanh.f32 %v2237_v1  ;;  %v2311_v10 = vsel %vm592_vm1, %v2277_v6, 0.0 }
 0x6e2   : > { %2312 = vadd.xlane.f32.xlu0 %v2311_v10 }
 0x6e6   : > { %v3526_v9 = vpop.eup %3525 }
 0x6e7   : > { %v2282_v18 = vmul.f32 %v3526_v9, %v4374_v24 }
 0x6e8   : > { %v3528_v14 = vpop.eup %3527 }
 0x6e9   : > { %v2280_v15 = vmul.f32 %v3528_v14, %v4374_v24  ;;  %v2326_v33 = vsel %vm592_vm1, %v2282_v18, 0.0 }
 0x6ea   : > { %v3530_v17 = vpop.eup %3529 }
 0x6eb   : > { %v2320_v40 = vsel %vm592_vm1, %v2280_v15, 0.0  ;;  %v2283_v34 = vmul.f32 %v3530_v17, %v4374_v24 }
 0x6ec   : > { %v3532_v12 = vpop.eup %3531  ;;  %2321 = vadd.xlane.f32.xlu1 %v2320_v40 }
 0x6ed   : > { %v2281_v2 = vmul.f32 %v3532_v12, %v4374_v24  ;;  %v2329_v37 = vsel %vm592_vm1, %v2283_v34, 0.0  ;;  %v2361_v24 = vmul.f32 %v3050_v30, %v4281_v29  ;;  %v2363_v29 = vmul.f32 %v3050_v30, %v4296_v28 }
 0x6ee   : > { %v2367_v28 = vmul.f32 %v3050_v30, %v4326_v8  ;;  %v2371_v8 = vmul.f32 %v3050_v30, %v4354_v47 }
 0x6ef   : > { %v2323_v32 = vsel %vm592_vm1, %v2281_v2, 0.0  ;;  %v2387_v11 = vsel %vm592_vm1, %v2361_v24, 0.0  ;;  %v2393_v49 = vsel %vm592_vm1, %v2363_v29, 0.0 }
 0x6f0   : > { %2324 = vadd.xlane.f32.xlu0 %v2323_v32  ;;  %2327 = vadd.xlane.f32.xlu1 %v2326_v33  ;;  %v2405_v5 = vsel %vm592_vm1, %v2367_v28, 0.0  ;;  %v2417_v19 = vsel %vm592_vm1, %v2371_v8, 0.0 }
 0x6f4   : > { %2330 = vadd.xlane.f32.xlu0 %v2329_v37  ;;  %2379 = vadd.xlane.f32.xlu1 %v2378_v27 }
 0x6f8   : > { %2382 = vadd.xlane.f32.xlu0 %v2381_v23  ;;  %2385 = vadd.xlane.f32.xlu1 %v2384_v43 }
 0x6fc   : > { %2388 = vadd.xlane.f32.xlu0 %v2387_v11  ;;  %2373 = vadd.xlane.f32.xlu1 %v2372_v0 }
 0x700   : > { %2376 = vadd.xlane.f32.xlu0 %v2375_v46  ;;  %2391 = vadd.xlane.f32.xlu1 %v2390_v48 }
 0x704   : > { %2394 = vadd.xlane.f32.xlu0 %v2393_v49  ;;  %2397 = vadd.xlane.f32.xlu1 %v2396_v13 }
 0x708   : > { %2400 = vadd.xlane.f32.xlu0 %v2399_v50  ;;  %2403 = vadd.xlane.f32.xlu1 %v2402_v20 }
 0x70c   : > { %2406 = vadd.xlane.f32.xlu0 %v2405_v5  ;;  %2409 = vadd.xlane.f32.xlu1 %v2408_v52 }
 0x710   : > { %2412 = vadd.xlane.f32.xlu0 %v2411_v22  ;;  %2415 = vadd.xlane.f32.xlu1 %v2414_v53 }
 0x714   : > { %2418 = vadd.xlane.f32.xlu0 %v2417_v19 }
 0x743   : > { %v2292_v35 = vpop.xlane.xlu0 %2291 }
 0x744   : > { %v2338_v54 = vadd.f32 %v4458_v63, %v2292_v35 }
 0x745   : > { %v2286_v45 = vpop.xlane.xlu1 %2285 }
 0x746   : > { %v2336_v55 = vadd.f32 %v4458_v63, %v2286_v45  ;;  %v2430_v58 = vsel %vm2420_vm6, %v2338_v54, -inf }
 0x748   : > { %v2421_v59 = vsel %vm2420_vm6, %v2336_v55, -inf }
 0x749   : > { %v2289_v44 = vpop.xlane.xlu0 %2288  ;;  %v2295_v25 = vpop.xlane.xlu1 %2294 }
 0x74a   : > { %v2337_v47 = vadd.f32 %v4458_v63, %v2289_v44  ;;  %v2339_v57 = vadd.f32 %v4458_v63, %v2295_v25 }
 0x74c   : > { %v2422_v3 = vsel %vm2420_vm6, %v2337_v47, -inf  ;;  %v2431_v41 = vsel %vm2420_vm6, %v2339_v57, -inf }
 0x74d   : > { %v2423_v36 = vmax.f32 %v2421_v59, %v2422_v3  ;;  %v2432_v1 = vmax.f32 %v2430_v58, %v2431_v41 }
 0x74f   : > { %v2424_v4 = vrot.slane %v2423_v36, 4  ;;  %v2433_v7 = vrot.slane %v2432_v1, 4 }
 0x751   : > { %v2425_v6 = vmax.f32 %v2423_v36, %v2424_v4  ;;  %v2434_v10 = vmax.f32 %v2432_v1, %v2433_v7 }
 0x753   : > { %v2426_v9 = vrot.slane %v2425_v6, 2  ;;  %v2435_v14 = vrot.slane %v2434_v10, 2  ;;  %v2304_v40 = vpop.xlane.xlu1 %2303 }
 0x754   : > { %v2342_v30 = vadd.f32 %v4458_v63, %v2304_v40 }
 0x755   : > { %v2427_v15 = vmax.f32 %v2425_v6, %v2426_v9  ;;  %v2436_v17 = vmax.f32 %v2434_v10, %v2435_v14  ;;  %v2298_v18 = vpop.xlane.xlu0 %2297 }
 0x756   : > { %v2448_v23 = vsel %vm2420_vm6, %v2342_v30, -inf  ;;  %v2340_v43 = vadd.f32 %v4458_v63, %v2298_v18 }
 0x757   : > { %v2428_v12 = vrot.slane %v2427_v15, 1  ;;  %v2437_v2 = vrot.slane %v2436_v17, 1 }
 0x758   : > { %v2439_v31 = vsel %vm2420_vm6, %v2340_v43, -inf }
 0x759   : > { %v2429_v32 = vmax.f32 %v2427_v15, %v2428_v12  ;;  %v2438_v33 = vmax.f32 %v2436_v17, %v2437_v2  ;;  %v2307_v34 = vpop.xlane.xlu0 %2306 }
 0x75a   : > { %v2343_v16 = vadd.f32 %v4458_v63, %v2307_v34 }
 0x75b   : > { %v2493_v37 = vsub.f32 %v2336_v55, %v2429_v32  ;;  %v2494_v27 = vsub.f32 %v2337_v47, %v2429_v32  ;;  %v2495_v21 = vsub.f32 %v2338_v54, %v2438_v33  ;;  %v2496_v42 = vsub.f32 %v2339_v57, %v2438_v33 }
 0x75c   : > { %v2449_v24 = vsel %vm2420_vm6, %v2343_v16, -inf }
 0x75d   : > { %v2509_v56 = vmul.f32 1.442695, %v2493_v37  ;;  %v2511_v11 = vmul.f32 1.442695, %v2494_v27  ;;  %v2513_v0 = vmul.f32 1.442695, %v2495_v21  ;;  %v2450_v61 = vmax.f32 %v2448_v23, %v2449_v24  ;;  %v2301_v26 = vpop.xlane.xlu0 %2300 }
 0x75e   : > { %v2515_v46 = vmul.f32 1.442695, %v2496_v42  ;;  %v2341_v48 = vadd.f32 %v4458_v63, %v2301_v26 }
 0x75f   : > { %3533 = vpow2.f32 %v2509_v56  ;;  %v2451_v29 = vrot.slane %v2450_v61, 4 }
 0x760   : > { %3535 = vpow2.f32 %v2511_v11  ;;  %v2440_v49 = vsel %vm2420_vm6, %v2341_v48, -inf }
 0x761   : > { %3537 = vpow2.f32 %v2513_v0  ;;  %v2452_v13 = vmax.f32 %v2450_v61, %v2451_v29  ;;  %v2441_v62 = vmax.f32 %v2439_v31, %v2440_v49 }
 0x762   : > { %3539 = vpow2.f32 %v2515_v46 }
 0x763   : > { %v2453_v39 = vrot.slane %v2452_v13, 2  ;;  %v2442_v50 = vrot.slane %v2441_v62, 4  ;;  %v2316_v20 = vpop.xlane.xlu1 %2315 }
 0x764   : > { %v4477_v5 = vadd.f32 %v4458_v63, %v2316_v20 }
 0x765   : > { %v2454_v28 = vmax.f32 %v2452_v13, %v2453_v39  ;;  %v2443_v51 = vmax.f32 %v2441_v62, %v2442_v50 }
 0x766   : > { %v2466_v35 = vsel %vm2420_vm6, %v4477_v5, -inf }
 0x767   : > { %v2455_v52 = vrot.slane %v2454_v28, 1  ;;  %v2444_v38 = vrot.slane %v2443_v51, 2  ;;  %v2319_v60 = vpop.xlane.xlu0 %2318  ;;  %v2310_v22 = vpop.xlane.xlu1 %2309 }
 0x768   : > { %v4480_v53 = vadd.f32 %v4458_v63, %v2319_v60  ;;  %v4487_v54 = vadd.f32 %v4458_v63, %v2310_v22 }
 0x769   : > { %v2456_v8 = vmax.f32 %v2454_v28, %v2455_v52  ;;  %v2445_v19 = vmax.f32 %v2443_v51, %v2444_v38 }
 0x76a   : > { %v2467_v45 = vsel %vm2420_vm6, %v4480_v53, -inf  ;;  %v2457_v9 = vsel %vm2420_vm6, %v4487_v54, -inf }
 0x76b   : > { %v2499_v55 = vsub.f32 %v2342_v30, %v2456_v8  ;;  %v2500_v44 = vsub.f32 %v2343_v16, %v2456_v8  ;;  %v2446_v25 = vrot.slane %v2445_v19, 1  ;;  %v2468_v47 = vmax.f32 %v2466_v35, %v2467_v45  ;;  %v2313_v57 = vpop.xlane.xlu0 %2312 }
 0x76c   : > { %v4489_v58 = vpop.eup %3533  ;;  %v4492_v59 = vadd.f32 %v4458_v63, %v2313_v57 }
 0x76d   : > { %v4494_v3 = vpop.eup %3535  ;;  %v2541_v41 = vsel %vm2420_vm6, %v4489_v58, 0.0  ;;  %v2521_v36 = vmul.f32 1.442695, %v2499_v55  ;;  %v2523_v1 = vmul.f32 1.442695, %v2500_v44  ;;  %v2447_v4 = vmax.f32 %v2445_v19, %v2446_v25 }
 0x76e   : > { %v4498_v7 = vpop.eup %3537  ;;  %v2542_v6 = vsel %vm2420_vm6, %v4494_v3, 0.0  ;;  %v2469_v10 = vrot.slane %v2468_v47, 4  ;;  %v2458_v14 = vsel %vm2420_vm6, %v4492_v59, -inf }
 0x76f   : > { %v4506_v15 = vpop.eup %3539  ;;  %v2543_v17 = vadd.f32 %v2542_v6, %v2541_v41  ;;  %v2550_v40 = vsel %vm2420_vm6, %v4498_v7, 0.0  ;;  %3541 = vpow2.f32 %v2521_v36  ;;  %v2497_v18 = vsub.f32 %v2340_v43, %v2447_v4 }
 0x770   : > { %v2551_v12 = vsel %vm2420_vm6, %v4506_v15, 0.0  ;;  %3543 = vpow2.f32 %v2523_v1  ;;  %v2498_v2 = vsub.f32 %v2341_v48, %v2447_v4  ;;  %v2470_v30 = vmax.f32 %v2468_v47, %v2469_v10 }
 0x771   : > { %v2552_v32 = vadd.f32 %v2551_v12, %v2550_v40  ;;  %v2517_v33 = vmul.f32 1.442695, %v2497_v18  ;;  %v2459_v34 = vmax.f32 %v2457_v9, %v2458_v14  ;;  %v2544_v27 = vrot.slane %v2543_v17, 4 }
 0x772   : > { %v2519_v16 = vmul.f32 1.442695, %v2498_v2  ;;  %v2471_v37 = vrot.slane %v2470_v30, 2 }
 0x773   : > { %v2553_v21 = vrot.slane %v2552_v32, 4  ;;  %3545 = vpow2.f32 %v2517_v33  ;;  %v2460_v42 = vrot.slane %v2459_v34, 4  ;;  %v2545_v0 = vadd.f32 %v2544_v27, %v2543_v17 }
 0x774   : > { %3547 = vpow2.f32 %v2519_v16  ;;  %v2472_v23 = vmax.f32 %v2470_v30, %v2471_v37 }
 0x775   : > { %v2461_v24 = vmax.f32 %v2459_v34, %v2460_v42  ;;  %v2322_v56 = vpop.xlane.xlu1 %2321  ;;  %v2554_v43 = vadd.f32 %v2553_v21, %v2552_v32  ;;  %v2546_v28 = vrot.slane %v2545_v0, 2 }
 0x776   : > { %v2473_v11 = vrot.slane %v2472_v23, 1  ;;  %v4513_v26 = vadd.f32 %v4458_v63, %v2322_v56 }
 0x777   : > { %v2462_v61 = vrot.slane %v2461_v24, 2  ;;  %v2555_v39 = vrot.slane %v2554_v43, 2  ;;  %v2547_v6 = vadd.f32 %v2546_v28, %v2545_v0 }
 0x778   : > { %v2474_v46 = vmax.f32 %v2472_v23, %v2473_v11  ;;  %v2475_v20 = vsel %vm2420_vm6, %v4513_v26, -inf }
 0x779   : > { %v2463_v48 = vmax.f32 %v2461_v24, %v2462_v61  ;;  %v2325_v29 = vpop.xlane.xlu0 %2324  ;;  %v2328_v31 = vpop.xlane.xlu1 %2327  ;;  %v2556_v44 = vadd.f32 %v2555_v39, %v2554_v43  ;;  %v2548_v34 = vrot.slane %v2547_v6, 1 }
 0x77a   : > { %v2503_v49 = vsub.f32 %v4477_v5, %v2474_v46  ;;  %v2504_v13 = vsub.f32 %v4480_v53, %v2474_v46  ;;  %v4518_v62 = vadd.f32 %v4458_v63, %v2325_v29  ;;  %v4527_v5 = vadd.f32 %v4458_v63, %v2328_v31 }
 0x77b   : > { %v2464_v50 = vrot.slane %v2463_v48, 1  ;;  %v2557_v2 = vrot.slane %v2556_v44, 1  ;;  %v2549_v11 = vadd.f32 %v2548_v34, %v2547_v6 }
 0x77c   : > { %v4522_v51 = vpop.eup %3541  ;;  %v2529_v52 = vmul.f32 1.442695, %v2503_v49  ;;  %v2531_v38 = vmul.f32 1.442695, %v2504_v13  ;;  %v2476_v60 = vsel %vm2420_vm6, %v4518_v62, -inf  ;;  %v2484_v1 = vsel %vm2420_vm6, %v4527_v5, -inf }
 0x77d   : > { %v4529_v22 = vpop.eup %3543  ;;  %v2568_v53 = vsel %vm2420_vm6, %v4522_v51, 0.0  ;;  %v2465_v8 = vmax.f32 %v2463_v48, %v2464_v50  ;;  %v2477_v19 = vmax.f32 %v2475_v20, %v2476_v60  ;;  %v2331_v35 = vpop.xlane.xlu0 %2330  ;;  %v2558_v42 = vadd.f32 %v2557_v2, %v2556_v44 }
 0x77e   : > { %v2569_v45 = vsel %vm2420_vm6, %v4529_v22, 0.0  ;;  %3549 = vpow2.f32 %v2529_v52  ;;  %v4536_v55 = vadd.f32 %v4458_v63, %v2331_v35 }
 0x77f   : > { %v2570_v25 = vadd.f32 %v2569_v45, %v2568_v53  ;;  %3551 = vpow2.f32 %v2531_v38  ;;  %v2501_v47 = vsub.f32 %v4487_v54, %v2465_v8  ;;  %v2502_v57 = vsub.f32 %v4492_v59, %v2465_v8 }
 0x780   : > { %v4540_v41 = vpop.eup %3545  ;;  %v2478_v36 = vrot.slane %v2477_v19, 4  ;;  %v2485_v4 = vsel %vm2420_vm6, %v4536_v55, -inf }
 0x781   : > { %v4546_v10 = vpop.eup %3547  ;;  %v2571_v63 = vrot.slane %v2570_v25, 4  ;;  %v2559_v9 = vsel %vm2420_vm6, %v4540_v41, 0.0  ;;  %v2525_v14 = vmul.f32 1.442695, %v2501_v47  ;;  %v2527_v54 = vmul.f32 1.442695, %v2502_v57  ;;  %v2383_v35 = vpop.xlane.xlu0 %2382 }
 0x782   : > { %v2560_v59 = vsel %vm2420_vm6, %v4546_v10, 0.0  ;;  %v2479_v17 = vmax.f32 %v2477_v19, %v2478_v36  ;;  %v2486_v40 = vmax.f32 %v2484_v1, %v2485_v4  ;;  %v2380_v19 = vpop.xlane.xlu1 %2379 }
 0x783   : > { %v2572_v18 = vadd.f32 %v2571_v63, %v2570_v25  ;;  %v2561_v12 = vadd.f32 %v2560_v59, %v2559_v9  ;;  %3553 = vpow2.f32 %v2525_v14 }
 0x784   : > { %3555 = vpow2.f32 %v2527_v54  ;;  %v2480_v30 = vrot.slane %v2479_v17, 2  ;;  %v2487_v32 = vrot.slane %v2486_v40, 4 }
 0x785   : > { %v2562_v33 = vrot.slane %v2561_v12, 4  ;;  %v2573_v16 = vrot.slane %v2572_v18, 2  ;;  %3557 = vrcp.f32 %v2558_v42  ;;  %v2389_v14 = vpop.xlane.xlu0 %2388 }
 0x786   : > { %v2481_v37 = vmax.f32 %v2479_v17, %v2480_v30  ;;  %v2488_v27 = vmax.f32 %v2486_v40, %v2487_v32  ;;  %3559 = vrcp.f32 %v2549_v11 }
 0x787   : > { %v2563_v21 = vadd.f32 %v2562_v33, %v2561_v12  ;;  %v2574_v23 = vadd.f32 %v2573_v16, %v2572_v18 }
 0x788   : > { %v2482_v24 = vrot.slane %v2481_v37, 1  ;;  %v2489_v56 = vrot.slane %v2488_v27, 2 }
 0x789   : > { %v2564_v43 = vrot.slane %v2563_v21, 2  ;;  %v2575_v0 = vrot.slane %v2574_v23, 1  ;;  %v2377_v30 = vpop.xlane.xlu0 %2376 }
 0x78a   : > { %v2483_v61 = vmax.f32 %v2481_v37, %v2482_v24  ;;  %v2490_v46 = vmax.f32 %v2488_v27, %v2489_v56 }
 0x78b   : > { %v4552_v48 = vpop.eup %3549  ;;  %v2565_v29 = vadd.f32 %v2564_v43, %v2563_v21  ;;  %v2576_v31 = vadd.f32 %v2575_v0, %v2574_v23 }
 0x78c   : > { %v4554_v49 = vpop.eup %3551  ;;  %v2586_v13 = vsel %vm2420_vm6, %v4552_v48, 0.0  ;;  %v2505_v39 = vsub.f32 %v4513_v26, %v2483_v61  ;;  %v2506_v50 = vsub.f32 %v4518_v62, %v2483_v61  ;;  %v2491_v20 = vrot.slane %v2490_v46, 1 }
 0x78d   : > { %v2587_v28 = vsel %vm2420_vm6, %v4554_v49, 0.0  ;;  %v2566_v52 = vrot.slane %v2565_v29, 1  ;;  %3561 = vrcp.f32 %v2576_v31 }
 0x78e   : > { %v2588_v38 = vadd.f32 %v2587_v28, %v2586_v13  ;;  %v2533_v60 = vmul.f32 1.442695, %v2505_v39  ;;  %v2535_v53 = vmul.f32 1.442695, %v2506_v50  ;;  %v2492_v8 = vmax.f32 %v2490_v46, %v2491_v20 }
 0x78f   : > { %v2567_v45 = vadd.f32 %v2566_v52, %v2565_v29  ;;  %v2395_v29 = vpop.xlane.xlu0 %2394 }
 0x790   : > { %v4562_v44 = vpop.eup %3553  ;;  %v2589_v25 = vrot.slane %v2588_v38, 4  ;;  %3563 = vpow2.f32 %v2533_v60  ;;  %v2507_v26 = vsub.f32 %v4527_v5, %v2492_v8  ;;  %v2508_v62 = vsub.f32 %v4536_v55, %v2492_v8  ;;  %v2386_v5 = vpop.xlane.xlu1 %2385 }
 0x791   : > { %v4566_v47 = vpop.eup %3555  ;;  %v2577_v57 = vsel %vm2420_vm6, %v4562_v44, 0.0  ;;  %3565 = vpow2.f32 %v2535_v53 }
 0x792   : > { %v2590_v36 = vadd.f32 %v2589_v25, %v2588_v38  ;;  %v2578_v1 = vsel %vm2420_vm6, %v4566_v47, 0.0  ;;  %v2537_v4 = vmul.f32 1.442695, %v2507_v26  ;;  %v2539_v6 = vmul.f32 1.442695, %v2508_v62  ;;  %v3558_v17 = vpop.eup %3557 }
 0x793   : > { %v2579_v63 = vadd.f32 %v2578_v1, %v2577_v57  ;;  %3567 = vrcp.f32 %v2567_v45  ;;  %v3560_v12 = vpop.eup %3559  ;;  %v2617_v23 = vmul.f32 %v3558_v17, %v4498_v7  ;;  %v2618_v24 = vmul.f32 %v3558_v17, %v4506_v15 }
 0x794   : > { %3569 = vpow2.f32 %v2537_v4  ;;  %v2591_v55 = vrot.slane %v2590_v36, 2  ;;  %v2374_v2 = vpop.xlane.xlu1 %2373  ;;  %v2614_v28 = vmul.f32 %v3560_v12, %v4489_v58 }
 0x795   : > { %v2580_v9 = vrot.slane %v2579_v63, 4  ;;  %3571 = vpow2.f32 %v2539_v6  ;;  %v2639_v15 = vmul.f32 %v2617_v23, %v2380_v19  ;;  %v2640_v20 = vmul.f32 %v2618_v24, %v2383_v35  ;;  %v2401_v35 = vpop.xlane.xlu0 %2400 }
 0x796   : > { %v2592_v59 = vadd.f32 %v2591_v55, %v2590_v36  ;;  %v2637_v62 = vmul.f32 %v2614_v28, %v2374_v2 }
 0x797   : > { %v2581_v54 = vadd.f32 %v2580_v9, %v2579_v63  ;;  %v2662_v26 = vsel %vm2420_vm6, %v2639_v15, 0.0  ;;  %v2663_v58 = vsel %vm2420_vm6, %v2640_v20, 0.0 }
 0x798   : > { %v2593_v18 = vrot.slane %v2592_v59, 1  ;;  %v2392_v46 = vpop.xlane.xlu1 %2391 }
 0x799   : > { %v2582_v40 = vrot.slane %v2581_v54, 2  ;;  %v2407_v2 = vpop.xlane.xlu0 %2406 }
 0x79a   : > { %v3562_v33 = vpop.eup %3561  ;;  %v2594_v34 = vadd.f32 %v2593_v18, %v2592_v59 }
 0x79b   : > { %v2583_v32 = vadd.f32 %v2582_v40, %v2581_v54  ;;  %v2623_v38 = vmul.f32 %v3562_v33, %v4522_v51  ;;  %v2624_v8 = vmul.f32 %v3562_v33, %v4529_v22 }
 0x79c   : > { %3573 = vrcp.f32 %v2594_v34  ;;  %v2398_v19 = vpop.xlane.xlu1 %2397 }
 0x79d   : > { %v4572_v16 = vpop.eup %3563  ;;  %v2584_v37 = vrot.slane %v2583_v32, 1  ;;  %v2643_v4 = vmul.f32 %v2623_v38, %v2392_v46  ;;  %v2644_v6 = vmul.f32 %v2624_v8, %v2395_v29 }
 0x79e   : > { %v4574_v27 = vpop.eup %3565  ;;  %v2595_v21 = vsel %vm2420_vm6, %v4572_v16, 0.0 }
 0x79f   : > { %v2596_v42 = vsel %vm2420_vm6, %v4574_v27, 0.0  ;;  %v2585_v31 = vadd.f32 %v2584_v37, %v2583_v32  ;;  %v2680_v40 = vsel %vm2420_vm6, %v2643_v4, 0.0  ;;  %v2681_v18 = vsel %vm2420_vm6, %v2644_v6, 0.0 }
 0x7a0   : > { %v3568_v56 = vpop.eup %3567  ;;  %v2597_v43 = vadd.f32 %v2596_v42, %v2595_v21  ;;  %v2682_v24 = vadd.f32 %v2681_v18, %v2680_v40 }
 0x7a1   : > { %v4582_v11 = vpop.eup %3569  ;;  %v2620_v0 = vmul.f32 %v3568_v56, %v4540_v41  ;;  %v2621_v61 = vmul.f32 %v3568_v56, %v4546_v10  ;;  %v2615_v10 = vmul.f32 %v3560_v12, %v4494_v3  ;;  %3575 = vrcp.f32 %v2585_v31  ;;  %v2404_v12 = vpop.xlane.xlu1 %2403 }
 0x7a2   : > { %v4586_v13 = vpop.eup %3571  ;;  %v2598_v39 = vrot.slane %v2597_v43, 4  ;;  %v2604_v50 = vsel %vm2420_vm6, %v4582_v11, 0.0 }
 0x7a3   : > { %v2605_v7 = vsel %vm2420_vm6, %v4586_v13, 0.0  ;;  %v2641_v60 = vmul.f32 %v2620_v0, %v2386_v5  ;;  %v2642_v53 = vmul.f32 %v2621_v61, %v2389_v14  ;;  %v2638_v36 = vmul.f32 %v2615_v10, %v2377_v30 }
 0x7a4   : > { %v2599_v52 = vadd.f32 %v2598_v39, %v2597_v43  ;;  %v2606_v41 = vadd.f32 %v2605_v7, %v2604_v50  ;;  %v2664_v5 = vadd.f32 %v2663_v58, %v2662_v26  ;;  %v2653_v14 = vsel %vm2420_vm6, %v2637_v62, 0.0  ;;  %v2413_v58 = vpop.xlane.xlu0 %2412 }
 0x7a5   : > { %v2671_v3 = vsel %vm2420_vm6, %v2641_v60, 0.0  ;;  %v2672_v51 = vsel %vm2420_vm6, %v2642_v53, 0.0  ;;  %v2654_v54 = vsel %vm2420_vm6, %v2638_v36, 0.0  ;;  %v2683_v39 = vrot.slane %v2682_v24, 4 }
 0x7a6   : > { %v2607_v45 = vrot.slane %v2606_v41, 4  ;;  %v2600_v25 = vrot.slane %v2599_v52, 2  ;;  %v2673_v55 = vadd.f32 %v2672_v51, %v2671_v3  ;;  %v2665_v37 = vrot.slane %v2664_v5, 4 }
 0x7a7   : > { %v2655_v23 = vadd.f32 %v2654_v54, %v2653_v14  ;;  %v2684_v38 = vadd.f32 %v2683_v39, %v2682_v24 }
 0x7a8   : > { %v2608_v57 = vadd.f32 %v2607_v45, %v2606_v41  ;;  %v2601_v1 = vadd.f32 %v2600_v25, %v2599_v52  ;;  %v2674_v42 = vrot.slane %v2673_v55, 4  ;;  %v2666_v0 = vadd.f32 %v2665_v37, %v2664_v5 }
 0x7a9   : > { %v3574_v9 = vpop.eup %3573  ;;  %v2656_v31 = vrot.slane %v2655_v23, 4  ;;  %v2685_v26 = vrot.slane %v2684_v38, 2 }
 0x7aa   : > { %v2602_v22 = vrot.slane %v2601_v1, 1  ;;  %v2609_v63 = vrot.slane %v2608_v57, 2  ;;  %v2629_v59 = vmul.f32 %v3574_v9, %v4552_v48  ;;  %v2630_v17 = vmul.f32 %v3574_v9, %v4554_v49 }
 0x7ab   : > { %v2675_v29 = vadd.f32 %v2674_v42, %v2673_v55  ;;  %v2667_v20 = vrot.slane %v2666_v0, 2  ;;  %v2657_v10 = vadd.f32 %v2656_v31, %v2655_v23  ;;  %v2686_v9 = vadd.f32 %v2685_v26, %v2684_v38 }
 0x7ac   : > { %v2603_v30 = vadd.f32 %v2602_v22, %v2601_v1  ;;  %v2610_v32 = vadd.f32 %v2609_v63, %v2608_v57  ;;  %v2647_v33 = vmul.f32 %v2629_v59, %v2404_v12  ;;  %v2648_v34 = vmul.f32 %v2630_v17, %v2407_v2  ;;  %v2419_v12 = vpop.xlane.xlu0 %2418  ;;  %v3051_v2 = vld [vmem:[%s4646_s5 + $0x7] ss:$0 sm:$0xff] }
 0x7ad   : > { %v2676_v41 = vrot.slane %v2675_v29, 2  ;;  %v2668_v8 = vadd.f32 %v2667_v20, %v2666_v0  ;;  %v2658_v25 = vrot.slane %v2657_v10, 2 }
 0x7ae   : > { %3577 = vrcp.f32 %v2603_v30  ;;  %v2611_v21 = vrot.slane %v2610_v32, 1  ;;  %v3576_v48 = vpop.eup %3575  ;;  %v2698_v49 = vsel %vm2420_vm6, %v2647_v33, 0.0  ;;  %v2699_v43 = vsel %vm2420_vm6, %v2648_v34, 0.0 }
 0x7af   : > { %v2626_v61 = vmul.f32 %v3576_v48, %v4562_v44  ;;  %v2627_v46 = vmul.f32 %v3576_v48, %v4566_v47  ;;  %v2700_v15 = vadd.f32 %v2699_v43, %v2698_v49  ;;  %v2677_v45 = vadd.f32 %v2676_v41, %v2675_v29 }
 0x7b0   : > { %v2612_v56 = vadd.f32 %v2611_v21, %v2610_v32  ;;  %v2669_v3 = vrot.slane %v2668_v8, 1  ;;  %v2659_v63 = vadd.f32 %v2658_v25, %v2657_v10  ;;  %v2687_v21 = vrot.slane %v2686_v9, 1 }
 0x7b1   : > { %v2645_v50 = vmul.f32 %v2626_v61, %v2398_v19  ;;  %v2646_v7 = vmul.f32 %v2627_v46, %v2401_v35  ;;  %v2701_v53 = vrot.slane %v2700_v15, 4  ;;  %v2410_v19 = vpop.xlane.xlu1 %2409  ;;  %v2678_v22 = vrot.slane %v2677_v45, 1 }
 0x7b2   : > { %3579 = vrcp.f32 %v2612_v56  ;;  %v2670_v40 = vadd.f32 %v2669_v3, %v2668_v8  ;;  %v2660_v37 = vrot.slane %v2659_v63, 1  ;;  %v2688_v61 = vadd.f32 %v2687_v21, %v2686_v9 }
 0x7b3   : > { %v2689_v28 = vsel %vm2420_vm6, %v2645_v50, 0.0  ;;  %v2690_v52 = vsel %vm2420_vm6, %v2646_v7, 0.0  ;;  %v2702_v35 = vadd.f32 %v2701_v53, %v2700_v15  ;;  %v2679_v30 = vadd.f32 %v2678_v22, %v2677_v45 }
 0x7b4   : > { %v2691_v60 = vadd.f32 %v2690_v52, %v2689_v28  ;;  %v2661_v0 = vadd.f32 %v2660_v37, %v2659_v63  ;;  %v2732_v52 = vadd.f32 %v3051_v2, %v2688_v61 }
 0x7b5   : > { %v2703_v14 = vrot.slane %v2702_v35, 2  ;;  %v2416_v17 = vpop.xlane.xlu1 %2415  ;;  %v2731_v48 = vadd.f32 %v3051_v2, %v2679_v30 }
 0x7b6   : > { %v2692_v44 = vrot.slane %v2691_v60, 4  ;;  %v2729_v28 = vadd.f32 %v3051_v2, %v2661_v0  ;;  %v2751_v45 = vrot.slane %v2732_v52, 5 }
 0x7b7   : > { %v2704_v42 = vadd.f32 %v2703_v14, %v2702_v35  ;;  %v2748_v7 = vrot.slane %v2731_v48, 6 }
 0x7b8   : > { %v2693_v62 = vadd.f32 %v2692_v44, %v2691_v60 }
 0x7b9   : > { %v2705_v46 = vrot.slane %v2704_v42, 1 }
 0x7ba   : > { %v2694_v1 = vrot.slane %v2693_v62, 2 }
 0x7bb   : > { %v3578_v47 = vpop.eup %3577  ;;  %v2706_v41 = vadd.f32 %v2705_v46, %v2704_v42 }
 0x7bc   : > { %v2632_v57 = vmul.f32 %v3578_v47, %v4572_v16  ;;  %v2633_v36 = vmul.f32 %v3578_v47, %v4574_v27  ;;  %v2695_v5 = vadd.f32 %v2694_v1, %v2693_v62 }
 0x7bd   : > { %v2734_v25 = vadd.f32 %v3051_v2, %v2706_v41 }
 0x7be   : > { %v2649_v51 = vmul.f32 %v2632_v57, %v2410_v19  ;;  %v2650_v4 = vmul.f32 %v2633_v36, %v2413_v58  ;;  %v2696_v32 = vrot.slane %v2695_v5, 1 }
 0x7bf   : > { %v3580_v6 = vpop.eup %3579  ;;  %v2757_v58 = vrot.slane %v2734_v25, 3 }
 0x7c0   : > { %v2707_v55 = vsel %vm2420_vm6, %v2649_v51, 0.0  ;;  %v2708_v54 = vsel %vm2420_vm6, %v2650_v4, 0.0  ;;  %v2635_v59 = vmul.f32 %v3580_v6, %v4582_v11  ;;  %v2636_v27 = vmul.f32 %v3580_v6, %v4586_v13 }
 0x7c1   : > { %v2709_v16 = vadd.f32 %v2708_v54, %v2707_v55  ;;  %v2730_v13 = vadd.f32 %v3051_v2, %v2670_v40  ;;  %v2697_v49 = vadd.f32 %v2696_v32, %v2695_v5 }
 0x7c2   : > { %v2651_v18 = vmul.f32 %v2635_v59, %v2416_v17  ;;  %v2652_v34 = vmul.f32 %v2636_v27, %v2419_v12 }
 0x7c3   : > { %v2710_v33 = vrot.slane %v2709_v16, 4  ;;  %v2745_v39 = vrot.slane %v2730_v13, 7  ;;  %v2733_v15 = vadd.f32 %v3051_v2, %v2697_v49 }
 0x7c4   : > { %v2716_v11 = vsel %vm2420_vm6, %v2651_v18, 0.0  ;;  %v2717_v24 = vsel %vm2420_vm6, %v2652_v34, 0.0 }
 0x7c5   : > { %v2711_v23 = vadd.f32 %v2710_v33, %v2709_v16  ;;  %v2718_v56 = vadd.f32 %v2717_v24, %v2716_v11  ;;  %v2747_v60 = vsel %vm2746_vm7, %v2745_v39, %v2729_v28  ;;  %v2754_v8 = vrot.slane %v2733_v15, 4 }
 0x7c6   : > { %v2750_v44 = vsel %vm2749_vm8, %v2748_v7, %v2747_v60 }
 0x7c7   : > { %v2712_v43 = vrot.slane %v2711_v23, 2  ;;  %v2719_v29 = vrot.slane %v2718_v56, 4  ;;  %v2753_v62 = vsel %vm2752_vm9, %v2751_v45, %v2750_v44 }
 0x7c8   : > { %v2756_v35 = vsel %vm2755_vm10, %v2754_v8, %v2753_v62 }
 0x7c9   : > { %v2713_v31 = vadd.f32 %v2712_v43, %v2711_v23  ;;  %v2720_v50 = vadd.f32 %v2719_v29, %v2718_v56  ;;  %v2759_v1 = vsel %vm2758_vm11, %v2757_v58, %v2756_v35 }
 0x7cb   : > { %v2714_v20 = vrot.slane %v2713_v31, 1  ;;  %v2721_v10 = vrot.slane %v2720_v50, 2 }
 0x7cd   : > { %v2715_v38 = vadd.f32 %v2714_v20, %v2713_v31  ;;  %v2722_v53 = vadd.f32 %v2721_v10, %v2720_v50 }
 0x7cf   : > { %v2735_v47 = vadd.f32 %v3051_v2, %v2715_v38  ;;  %v2723_v26 = vrot.slane %v2722_v53, 1 }
 0x7d1   : > { %v2724_v19 = vadd.f32 %v2723_v26, %v2722_v53  ;;  %v2760_v57 = vrot.slane %v2735_v47, 2 }
 0x7d3   : > { %v2736_v36 = vadd.f32 %v3051_v2, %v2724_v19  ;;  %v2762_v51 = vsel %vm2761_vm12, %v2760_v57, %v2759_v1 }
 0x7d5   : > { %v2763_v3 = vrot.slane %v2736_v36, 1 }
 0x7d7   : > { %v2765_v4 = vsel %vm2764_vm13, %v2763_v3, %v2762_v51 }
 0x7d8   : > { %2767 = vst.msk [vmem:[%s289_s15] sm:$0xff] %vm2420_vm6, %v2765_v4 }
 0x7d9 PF: > { %p16_p8 = scmp.ge.s32.totalorder %s3724_s26, 4   ;;  %s4653_s21 = smov %s3651_s22 }
 0x7da   : > { %s4654_s22 = smov %s3655_s23  ;;  %s4655_s23 = smov %s3734_s29 }
 0x7db   : > { %s4656_s24 = smov %s3724_s26  ;;  %18 = sbr.rel (!%p16_p8) target bundleno = 3 (0x3), region = 89 }
 0x7e0   :  { %2787 = vsyncpa [#allocation5], 1 }
 0x7e1   :  { %2789 = vsyncpa [#allocation5 + $0x1], 1 }

</bundles_post_ra>
